<compile_context>
chip_gen: v7x
topology: tpu7x:2x2x1
jax: 0.10.0
libtpu: 0.0.40
codegen_flags: <defaults>
</compile_context>

<pallas_src>
import functools

import numpy as np
import jax
import jax.numpy as jnp
from jax import lax
from jax.experimental import pallas as pl
from jax.experimental.pallas import tpu as pltpu

GRAY_W = np.array([0.2989, 0.587, 0.114], np.float32)   # torchvision Grayscale(3)
_GRAY_NORM = float(np.linalg.norm(GRAY_W))               # std factor of gray-mixed iid noise
_NOISE_STD = float(np.sqrt(0.02 ** 2 + 0.01 ** 2))       # the two Lambda noise adds combined


# ----------------------------------------------------------------------------
# host-side helpers: linear operators for resize / crop+adaptive-pool
# ----------------------------------------------------------------------------
def _bilinear_matrix(out_len, in_len):
    """F.interpolate(mode='bilinear', align_corners=False) along one axis."""
    m = np.zeros((out_len, in_len), np.float32)
    scale = in_len / out_len
    for i in range(out_len):
        src = max((i + 0.5) * scale - 0.5, 0.0)
        i0 = min(int(np.floor(src)), in_len - 1)
        i1 = min(i0 + 1, in_len - 1)
        frac = src - i0
        m[i, i0] += 1.0 - frac
        m[i, i1] += frac
    return m


def _adaptive_pool_matrix(full_len, offset, size, out_len):
    """adaptive_avg_pool over the crop [offset, offset+size) of the full axis."""
    m = np.zeros((out_len, full_len), np.float32)
    for r in range(out_len):
        start = (r * size) // out_len
        a = (r + 1) * size
        end = -((-a) // out_len)            # ceil(a / out_len)
        m[r, offset + start:offset + end] = 1.0 / (end - start)
    return m


# ----------------------------------------------------------------------------
# Pallas kernel: one (cutout-group, batch-image) tile per grid step
# ----------------------------------------------------------------------------
def _cutout_kernel(mix_ref, x_ref, py_ref, px_ref, noise_ref, o_ref,
                   *, n_blk, n_chan, cut_size):
    # mix_ref  : SMEM (N*C*C,)        f32  channel-mix scalars (scalar prefetch)
    # x_ref    : VMEM (1, C, H, W)    f32  input image (no transpose/cast needed)
    # py_ref   : VMEM (NB, S, H)      f32  row operators  (resize+crop+pool)
    # px_ref   : VMEM (NB, W, S)      f32  col operators^T (resize+crop+pool+flip)
    # noise_ref: VMEM (NB, 1, C*S, S) f32  additive augmentation noise
    # o_ref    : VMEM (NB, 1, C*S, S) f32  output
    C, S = n_chan, cut_size
    grp = pl.program_id(0)

    def body(i, carry):
        row = py_ref[i]                      # (S, H)
        colT = px_ref[i]                     # (W, S)
        # per-channel pooling: two small MXU matmuls per channel, f32 accumulation
        pooled = []
        for c in range(C):
            t = jnp.dot(row, x_ref[0, c], preferred_element_type=jnp.float32)    # (S, W)
            pooled.append(jnp.dot(t, colT, preferred_element_type=jnp.float32))  # (S, S)
        # channel mix (pre/post grayscale folded into a (C,C) matrix per cutout),
        # applied as scalar-weighted adds; noise is folded into the accumulator.
        base = (grp * n_blk + i) * (C * C)
        for d in range(C):
            acc = noise_ref[i, 0, d * S:(d + 1) * S, :]
            for c in range(C):
                acc = acc + mix_ref[base + d * C + c] * pooled[c]
            o_ref[i, 0, d * S:(d + 1) * S, :] = acc
        return carry

    lax.fori_loop(0, n_blk, body, 0, unroll=(n_blk <= 8))


def _op_spec(shape, index_map):
    """Grid-(nearly-)invariant operator tensors: single-buffer them to save VMEM."""
    try:
        return pl.BlockSpec(shape, index_map, pipeline_mode=pl.Buffered(1))
    except (AttributeError, TypeError):      # very old jax: no pipeline_mode/Buffered
        return pl.BlockSpec(shape, index_map)


@functools.lru_cache(maxsize=None)
def _build_forward(B, C, H, W, n_cut, cut_size, n_groups):
    N, S, G = n_cut, cut_size, n_groups
    NB = N // G                              # cutouts per grid step
    CS = C * S

    kernel = functools.partial(_cutout_kernel, n_blk=NB, n_chan=C, cut_size=S)

    # VMEM budget: x double-buffered, operators single-buffered, noise/out double.
    blk_x, blk_py, blk_px = C * H * W * 4, NB * S * H * 4, NB * W * S * 4
    blk_io = NB * CS * S * 4
    est = 2 * blk_x + blk_py + blk_px + 4 * blk_io + 4 * C * S * max(W, S) * 4
    vmem_limit = int(min(max(est * 3 // 2, 32 << 20), 100 << 20))

    call = pl.pallas_call(
        kernel,
        out_shape=jax.ShapeDtypeStruct((N, B, CS, S), jnp.float32),
        grid_spec=pltpu.PrefetchScalarGridSpec(
            num_scalar_prefetch=1,                      # channel-mix scalars -> SMEM
            grid=(G, B),
            in_specs=[
                pl.BlockSpec((1, C, H, W), lambda g, b, *_: (b, 0, 0, 0)),
                _op_spec((NB, S, H), lambda g, b, *_: (g, 0, 0)),
                _op_spec((NB, W, S), lambda g, b, *_: (g, 0, 0)),
                pl.BlockSpec((NB, 1, CS, S), lambda g, b, *_: (g, b, 0, 0)),
            ],
            out_specs=pl.BlockSpec((NB, 1, CS, S), lambda g, b, *_: (g, b, 0, 0)),
        ),
        compiler_params=pltpu.CompilerParams(
            dimension_semantics=("parallel", "parallel"),
            vmem_limit_bytes=vmem_limit),
    )

    def fwd(x, key, iid_scale, shared_scale, mix_flat, py_all, px_all):
        # Additive aug noise (one normal draw; channel 0 reused as the shared noise
        # for post-RandomGrayscale cutouts, with std sigma*||gray_w||).
        iid = jax.random.normal(key, (N, B, C, S, S), dtype=jnp.float32)
        shared = jnp.broadcast_to(iid[:, :, :1], iid.shape)
        noise = (iid_scale[:, None, None, None, None] * iid
                 + shared_scale[:, None, None, None, None] * shared)
        noise = noise.reshape(N, B, CS, S)
        out = call(mix_flat, x, py_all, px_all, noise)   # (N, B, C*S, S)
        return out.reshape(N * B, C, S, S)               # free contiguous view

    return jax.jit(fwd)


# ----------------------------------------------------------------------------
# MakeCutouts orchestration (host randomness + operator construction = glue)
# ----------------------------------------------------------------------------
class MakeCutouts:
    def __init__(self, cut_size, cutn, cut_pow=1.0,
                 cutn_whole_portion=0.0, cutn_bw_portion=0.2):
        self.cut_size = cut_size
        self.cutn = cutn
        self.cut_pow = cut_pow
        self.cutn_whole_portion = cutn_whole_portion    # unused by the reference forward
        self.cutn_bw_portion = cutn_bw_portion
        self.resize_size = 224                          # RandResize(224, 0.5)
        self.resize_chance = 0.5
        if cutn == 1:
            self._cut_1, self._cut_2 = 0, 0
        else:
            cut_1 = round(cutn * (1 - cutn_bw_portion))
            self._cut_1, self._cut_2 = cut_1, cutn - cut_1

    def __call__(self, x, key):
        x = jnp.asarray(x, jnp.float32)
        B, C, H0, W0 = x.shape
        S, N = self.cut_size, self.cutn

        # ---- ONE batched host-side random draw (single device->host transfer) ----
        k_u, k_noise = jax.random.split(key)
        u = np.asarray(jax.random.uniform(k_u, (1 + 5 * N,), dtype=jnp.float32))

        # ---- RandResize(224, 0.5): folded into the pooling operators, so the
        # kernel shapes (and the compiled program) never depend on the coin. ----
        if float(u[0]) < self.resize_chance:
            sideY = sideX = self.resize_size
            ry = _bilinear_matrix(sideY, H0)
            rx = _bilinear_matrix(sideX, W0)
        else:
            sideY, sideX = H0, W0
            ry = np.eye(H0, dtype=np.float32)
            rx = np.eye(W0, dtype=np.float32)

        max_size = min(sideX, sideY)
        min_size = min(sideX, sideY, S)

        eye = np.eye(C, dtype=np.float32)
        grayM = (np.tile(GRAY_W[None, :], (C, 1)) if C == 3 else eye).astype(np.float32)

        rows, colTs, mixes, iid_s, shr_s = [], [], [], [], []

        def add_cutout(row_pool, col_pool, mix, noisy, post_gray):
            rows.append((row_pool @ ry).astype(np.float32))        # (S, H0)
            colTs.append((col_pool @ rx).T.astype(np.float32))     # (W0, S)
            mixes.append(np.asarray(mix, np.float32))              # (C, C): out[d]=sum_c mix[d,c]*in[c]
            iid_s.append(_NOISE_STD if (noisy and not post_gray) else 0.0)
            shr_s.append(_NOISE_STD * _GRAY_NORM if (noisy and post_gray) else 0.0)

        if N == 1:
            add_cutout(_adaptive_pool_matrix(sideY, 0, sideY, S),
                       _adaptive_pool_matrix(sideX, 0, sideX, S), eye, False, False)
        else:
            cut_1, cut_2 = self._cut_1, self._cut_2
            for i in range(cut_1):
                su, oxu, oyu, fu, gu = (float(v) for v in u[1 + 5 * i: 6 + 5 * i])
                size = int(su ** self.cut_pow * (max_size - min_size) + min_size)
                size = max(min(size, max_size), 1)
                offsetx = min(int(oxu * (sideX - size + 1)), sideX - size)
                offsety = min(int(oyu * (sideY - size + 1)), sideY - size)
                row_pool = _adaptive_pool_matrix(sideY, offsety, size, S)
                col_pool = _adaptive_pool_matrix(sideX, offsetx, size, S)
                if fu < 0.5:                          # RandomHorizontalFlip(p=0.5), post-pool
                    col_pool = col_pool[::-1, :]
                gpre = grayM if i < int(self.cutn_bw_portion * cut_1) else eye
                post_gray = gu < 0.5                  # RandomGrayscale(p=0.5)
                gpost = grayM if post_gray else eye
                # TODO(synk): tvt.RandomAffine(degrees=15, translate=(0.1, 0.1)) is not
                # a separable linear map along H/W; it is skipped.
                add_cutout(row_pool, col_pool, gpost @ gpre, True, post_gray)
            for i in range(cut_2):
                # TODO(synk): TF.rotate(+-10deg, expand=True, fill=1) is not separable;
                # the unrotated full frame is pooled instead.
                gpre = grayM if i < int(self.cutn_bw_portion * cut_2) else eye
                add_cutout(_adaptive_pool_matrix(sideY, 0, sideY, S),
                           _adaptive_pool_matrix(sideX, 0, sideX, S), gpre, False, False)

        py_all = jnp.asarray(np.stack(rows))                        # (N, S, H0)   f32
        px_all = jnp.asarray(np.stack(colTs))                       # (N, W0, S)   f32
        mix_flat = jnp.asarray(np.stack(mixes).reshape(-1))         # (N*C*C,)     f32
        iid_scale = jnp.asarray(np.asarray(iid_s, np.float32))      # (N,)
        shared_scale = jnp.asarray(np.asarray(shr_s, np.float32))   # (N,)

        n_groups = 2 if (N % 2 == 0 and N >= 4) else 1              # 2nd parallel axis (v7x)
        fwd = _build_forward(B, C, H0, W0, N, S, n_groups)
        return fwd(x, k_noise, iid_scale, shared_scale, mix_flat, py_all, px_all)


if __name__ == "__main__":
    key = jax.random.PRNGKey(0)
    kx, kfwd = jax.random.split(key)
    x = jax.random.uniform(kx, (2, 3, 32, 32), jnp.float32)   # NCHW

    mc = MakeCutouts(cut_size=8, cutn=8, cut_pow=1.0,
                     cutn_whole_portion=0.0, cutn_bw_portion=0.2)
    out = jax.block_until_ready(mc(x, kfwd))

    assert out.shape == (8 * 2, 3, 8, 8), out.shape
    assert out.dtype == jnp.float32
    assert bool(jnp.all(jnp.isfinite(out)))
    print("KERNEL_OK")
</pallas_src>

<mosaic_0001>
module attributes {stable_mosaic.version = 11 : i64} {
  func.func @_cutout_kernel(%arg0: i32, %arg1: i32, %arg2: memref<72xf32, #tpu.memory_space<smem>>, %arg3: memref<1x3x32x32xf32, #tpu.memory_space<vmem>>, %arg4: memref<4x8x32xf32, #tpu.memory_space<vmem>>, %arg5: memref<4x32x8xf32, #tpu.memory_space<vmem>>, %arg6: memref<4x1x24x8xf32, #tpu.memory_space<vmem>>, %arg7: memref<4x1x24x8xf32, #tpu.memory_space<vmem>>) attributes {dimension_semantics = [#tpu.dimension_semantics<parallel>, #tpu.dimension_semantics<parallel>], iteration_bounds = array<i64: 2, 2>, scalar_prefetch = 1 : i64, scratch_operands = 0 : i64, tpu.core_type = #tpu.core_type<tc>, window_params = [{transform_indices = @transform_0, window_bounds = array<i64: 1, 3, 32, 32>}, {pipeline_mode = #tpu.pipeline_mode<synchronous>, transform_indices = @transform_1, window_bounds = array<i64: 4, 8, 32>}, {pipeline_mode = #tpu.pipeline_mode<synchronous>, transform_indices = @transform_2, window_bounds = array<i64: 4, 32, 8>}, {transform_indices = @transform_3, window_bounds = array<i64: 4, 1, 24, 8>}, {transform_indices = @transform_4, window_bounds = array<i64: 4, 1, 24, 8>}]} {
    %c0_i32 = arith.constant 0 : i32
    %0 = arith.index_cast %c0_i32 : i32 to index
    %c0 = arith.constant 0 : index
    %c0_0 = arith.constant 0 : index
    %1 = vector.load %arg4[%0, %c0, %c0_0] : memref<4x8x32xf32, #tpu.memory_space<vmem>>, vector<1x8x32xf32>
    %2 = vector.shape_cast %1 : vector<1x8x32xf32> to vector<8x32xf32>
    %3 = arith.index_cast %c0_i32 : i32 to index
    %c0_1 = arith.constant 0 : index
    %c0_2 = arith.constant 0 : index
    %4 = vector.load %arg5[%3, %c0_1, %c0_2] : memref<4x32x8xf32, #tpu.memory_space<vmem>>, vector<1x32x8xf32>
    %5 = vector.shape_cast %4 : vector<1x32x8xf32> to vector<32x8xf32>
    %c0_3 = arith.constant 0 : index
    %c0_4 = arith.constant 0 : index
    %c0_5 = arith.constant 0 : index
    %c0_6 = arith.constant 0 : index
    %6 = vector.load %arg3[%c0_3, %c0_4, %c0_5, %c0_6] : memref<1x3x32x32xf32, #tpu.memory_space<vmem>>, vector<1x1x32x32xf32>
    %7 = vector.shape_cast %6 : vector<1x1x32x32xf32> to vector<32x32xf32>
    %cst = arith.constant dense<0.000000e+00> : vector<8x32xf32>
    %8 = tpu.matmul %2, %7, %cst {dimension_numbers = #tpu.dot_dimension_numbers<[1], [0], [0], [1], [0, 0, 1, 1], [], []>} : vector<8x32xf32>, vector<32x32xf32>, vector<8x32xf32> -> vector<8x32xf32>
    %cst_7 = arith.constant dense<0.000000e+00> : vector<8x8xf32>
    %9 = tpu.matmul %8, %5, %cst_7 {dimension_numbers = #tpu.dot_dimension_numbers<[1], [0], [0], [1], [0, 0, 1, 1], [], []>} : vector<8x32xf32>, vector<32x8xf32>, vector<8x8xf32> -> vector<8x8xf32>
    %c0_8 = arith.constant 0 : index
    %c1 = arith.constant 1 : index
    %c0_9 = arith.constant 0 : index
    %c0_10 = arith.constant 0 : index
    %10 = vector.load %arg3[%c0_8, %c1, %c0_9, %c0_10] : memref<1x3x32x32xf32, #tpu.memory_space<vmem>>, vector<1x1x32x32xf32>
    %11 = vector.shape_cast %10 : vector<1x1x32x32xf32> to vector<32x32xf32>
    %cst_11 = arith.constant dense<0.000000e+00> : vector<8x32xf32>
    %12 = tpu.matmul %2, %11, %cst_11 {dimension_numbers = #tpu.dot_dimension_numbers<[1], [0], [0], [1], [0, 0, 1, 1], [], []>} : vector<8x32xf32>, vector<32x32xf32>, vector<8x32xf32> -> vector<8x32xf32>
    %cst_12 = arith.constant dense<0.000000e+00> : vector<8x8xf32>
    %13 = tpu.matmul %12, %5, %cst_12 {dimension_numbers = #tpu.dot_dimension_numbers<[1], [0], [0], [1], [0, 0, 1, 1], [], []>} : vector<8x32xf32>, vector<32x8xf32>, vector<8x8xf32> -> vector<8x8xf32>
    %c0_13 = arith.constant 0 : index
    %c2 = arith.constant 2 : index
    %c0_14 = arith.constant 0 : index
    %c0_15 = arith.constant 0 : index
    %14 = vector.load %arg3[%c0_13, %c2, %c0_14, %c0_15] : memref<1x3x32x32xf32, #tpu.memory_space<vmem>>, vector<1x1x32x32xf32>
    %15 = vector.shape_cast %14 : vector<1x1x32x32xf32> to vector<32x32xf32>
    %cst_16 = arith.constant dense<0.000000e+00> : vector<8x32xf32>
    %16 = tpu.matmul %2, %15, %cst_16 {dimension_numbers = #tpu.dot_dimension_numbers<[1], [0], [0], [1], [0, 0, 1, 1], [], []>} : vector<8x32xf32>, vector<32x32xf32>, vector<8x32xf32> -> vector<8x32xf32>
    %cst_17 = arith.constant dense<0.000000e+00> : vector<8x8xf32>
    %17 = tpu.matmul %16, %5, %cst_17 {dimension_numbers = #tpu.dot_dimension_numbers<[1], [0], [0], [1], [0, 0, 1, 1], [], []>} : vector<8x32xf32>, vector<32x8xf32>, vector<8x8xf32> -> vector<8x8xf32>
    %c4_i32 = arith.constant 4 : i32
    %18 = arith.muli %arg0, %c4_i32 : i32
    %19 = arith.addi %18, %c0_i32 : i32
    %c9_i32 = arith.constant 9 : i32
    %20 = arith.muli %19, %c9_i32 : i32
    %21 = arith.index_cast %c0_i32 : i32 to index
    %c0_18 = arith.constant 0 : index
    %c0_19 = arith.constant 0 : index
    %c0_20 = arith.constant 0 : index
    %22 = vector.load %arg6[%21, %c0_18, %c0_19, %c0_20] : memref<4x1x24x8xf32, #tpu.memory_space<vmem>>, vector<1x1x8x8xf32>
    %23 = vector.shape_cast %22 : vector<1x1x8x8xf32> to vector<8x8xf32>
    %c0_i32_21 = arith.constant 0 : i32
    %24 = arith.addi %20, %c0_i32_21 : i32
    %c0_i32_22 = arith.constant 0 : i32
    %25 = arith.addi %24, %c0_i32_22 : i32
    %26 = arith.index_cast %25 : i32 to index
    %27 = memref.load %arg2[%26] : memref<72xf32, #tpu.memory_space<smem>>
    %28 = vector.broadcast %27 : f32 to vector<8x8xf32>
    %29 = arith.mulf %28, %9 : vector<8x8xf32>
    %30 = arith.addf %23, %29 : vector<8x8xf32>
    %c0_i32_23 = arith.constant 0 : i32
    %31 = arith.addi %20, %c0_i32_23 : i32
    %c1_i32 = arith.constant 1 : i32
    %32 = arith.addi %31, %c1_i32 : i32
    %33 = arith.index_cast %32 : i32 to index
    %34 = memref.load %arg2[%33] : memref<72xf32, #tpu.memory_space<smem>>
    %35 = vector.broadcast %34 : f32 to vector<8x8xf32>
    %36 = arith.mulf %35, %13 : vector<8x8xf32>
    %37 = arith.addf %30, %36 : vector<8x8xf32>
    %c0_i32_24 = arith.constant 0 : i32
    %38 = arith.addi %20, %c0_i32_24 : i32
    %c2_i32 = arith.constant 2 : i32
    %39 = arith.addi %38, %c2_i32 : i32
    %40 = arith.index_cast %39 : i32 to index
    %41 = memref.load %arg2[%40] : memref<72xf32, #tpu.memory_space<smem>>
    %42 = vector.broadcast %41 : f32 to vector<8x8xf32>
    %43 = arith.mulf %42, %17 : vector<8x8xf32>
    %44 = arith.addf %37, %43 : vector<8x8xf32>
    %45 = arith.index_cast %c0_i32 : i32 to index
    %c0_25 = arith.constant 0 : index
    %c0_26 = arith.constant 0 : index
    %c0_27 = arith.constant 0 : index
    %46 = vector.load %arg7[%45, %c0_25, %c0_26, %c0_27] : memref<4x1x24x8xf32, #tpu.memory_space<vmem>>, vector<1x1x8x8xf32>
    %47 = vector.shape_cast %46 : vector<1x1x8x8xf32> to vector<8x8xf32>
    %48 = vector.shape_cast %44 : vector<8x8xf32> to vector<1x1x8x8xf32>
    tpu.vector_store %arg7[%45, %c0_25, %c0_26, %c0_27], %48 {strides = array<i32>} : memref<4x1x24x8xf32, #tpu.memory_space<vmem>>, vector<1x1x8x8xf32>,
    %49 = arith.index_cast %c0_i32 : i32 to index
    %c0_28 = arith.constant 0 : index
    %c8 = arith.constant 8 : index
    %c0_29 = arith.constant 0 : index
    %50 = vector.load %arg6[%49, %c0_28, %c8, %c0_29] : memref<4x1x24x8xf32, #tpu.memory_space<vmem>>, vector<1x1x8x8xf32>
    %51 = vector.shape_cast %50 : vector<1x1x8x8xf32> to vector<8x8xf32>
    %c3_i32 = arith.constant 3 : i32
    %52 = arith.addi %20, %c3_i32 : i32
    %c0_i32_30 = arith.constant 0 : i32
    %53 = arith.addi %52, %c0_i32_30 : i32
    %54 = arith.index_cast %53 : i32 to index
    %55 = memref.load %arg2[%54] : memref<72xf32, #tpu.memory_space<smem>>
    %56 = vector.broadcast %55 : f32 to vector<8x8xf32>
    %57 = arith.mulf %56, %9 : vector<8x8xf32>
    %58 = arith.addf %51, %57 : vector<8x8xf32>
    %c3_i32_31 = arith.constant 3 : i32
    %59 = arith.addi %20, %c3_i32_31 : i32
    %c1_i32_32 = arith.constant 1 : i32
    %60 = arith.addi %59, %c1_i32_32 : i32
    %61 = arith.index_cast %60 : i32 to index
    %62 = memref.load %arg2[%61] : memref<72xf32, #tpu.memory_space<smem>>
    %63 = vector.broadcast %62 : f32 to vector<8x8xf32>
    %64 = arith.mulf %63, %13 : vector<8x8xf32>
    %65 = arith.addf %58, %64 : vector<8x8xf32>
    %c3_i32_33 = arith.constant 3 : i32
    %66 = arith.addi %20, %c3_i32_33 : i32
    %c2_i32_34 = arith.constant 2 : i32
    %67 = arith.addi %66, %c2_i32_34 : i32
    %68 = arith.index_cast %67 : i32 to index
    %69 = memref.load %arg2[%68] : memref<72xf32, #tpu.memory_space<smem>>
    %70 = vector.broadcast %69 : f32 to vector<8x8xf32>
    %71 = arith.mulf %70, %17 : vector<8x8xf32>
    %72 = arith.addf %65, %71 : vector<8x8xf32>
    %73 = arith.index_cast %c0_i32 : i32 to index
    %c0_35 = arith.constant 0 : index
    %c8_36 = arith.constant 8 : index
    %c0_37 = arith.constant 0 : index
    %74 = vector.load %arg7[%73, %c0_35, %c8_36, %c0_37] : memref<4x1x24x8xf32, #tpu.memory_space<vmem>>, vector<1x1x8x8xf32>
    %75 = vector.shape_cast %74 : vector<1x1x8x8xf32> to vector<8x8xf32>
    %76 = vector.shape_cast %72 : vector<8x8xf32> to vector<1x1x8x8xf32>
    tpu.vector_store %arg7[%73, %c0_35, %c8_36, %c0_37], %76 {strides = array<i32>} : memref<4x1x24x8xf32, #tpu.memory_space<vmem>>, vector<1x1x8x8xf32>,
    %77 = arith.index_cast %c0_i32 : i32 to index
    %c0_38 = arith.constant 0 : index
    %c16 = arith.constant 16 : index
    %c0_39 = arith.constant 0 : index
    %78 = vector.load %arg6[%77, %c0_38, %c16, %c0_39] : memref<4x1x24x8xf32, #tpu.memory_space<vmem>>, vector<1x1x8x8xf32>
    %79 = vector.shape_cast %78 : vector<1x1x8x8xf32> to vector<8x8xf32>
    %c6_i32 = arith.constant 6 : i32
    %80 = arith.addi %20, %c6_i32 : i32
    %c0_i32_40 = arith.constant 0 : i32
    %81 = arith.addi %80, %c0_i32_40 : i32
    %82 = arith.index_cast %81 : i32 to index
    %83 = memref.load %arg2[%82] : memref<72xf32, #tpu.memory_space<smem>>
    %84 = vector.broadcast %83 : f32 to vector<8x8xf32>
    %85 = arith.mulf %84, %9 : vector<8x8xf32>
    %86 = arith.addf %79, %85 : vector<8x8xf32>
    %c6_i32_41 = arith.constant 6 : i32
    %87 = arith.addi %20, %c6_i32_41 : i32
    %c1_i32_42 = arith.constant 1 : i32
    %88 = arith.addi %87, %c1_i32_42 : i32
    %89 = arith.index_cast %88 : i32 to index
    %90 = memref.load %arg2[%89] : memref<72xf32, #tpu.memory_space<smem>>
    %91 = vector.broadcast %90 : f32 to vector<8x8xf32>
    %92 = arith.mulf %91, %13 : vector<8x8xf32>
    %93 = arith.addf %86, %92 : vector<8x8xf32>
    %c6_i32_43 = arith.constant 6 : i32
    %94 = arith.addi %20, %c6_i32_43 : i32
    %c2_i32_44 = arith.constant 2 : i32
    %95 = arith.addi %94, %c2_i32_44 : i32
    %96 = arith.index_cast %95 : i32 to index
    %97 = memref.load %arg2[%96] : memref<72xf32, #tpu.memory_space<smem>>
    %98 = vector.broadcast %97 : f32 to vector<8x8xf32>
    %99 = arith.mulf %98, %17 : vector<8x8xf32>
    %100 = arith.addf %93, %99 : vector<8x8xf32>
    %101 = arith.index_cast %c0_i32 : i32 to index
    %c0_45 = arith.constant 0 : index
    %c16_46 = arith.constant 16 : index
    %c0_47 = arith.constant 0 : index
    %102 = vector.load %arg7[%101, %c0_45, %c16_46, %c0_47] : memref<4x1x24x8xf32, #tpu.memory_space<vmem>>, vector<1x1x8x8xf32>
    %103 = vector.shape_cast %102 : vector<1x1x8x8xf32> to vector<8x8xf32>
    %104 = vector.shape_cast %100 : vector<8x8xf32> to vector<1x1x8x8xf32>
    tpu.vector_store %arg7[%101, %c0_45, %c16_46, %c0_47], %104 {strides = array<i32>} : memref<4x1x24x8xf32, #tpu.memory_space<vmem>>, vector<1x1x8x8xf32>,
    %c1_i32_48 = arith.constant 1 : i32
    %105 = arith.index_cast %c1_i32_48 : i32 to index
    %c0_49 = arith.constant 0 : index
    %c0_50 = arith.constant 0 : index
    %106 = vector.load %arg4[%105, %c0_49, %c0_50] : memref<4x8x32xf32, #tpu.memory_space<vmem>>, vector<1x8x32xf32>
    %107 = vector.shape_cast %106 : vector<1x8x32xf32> to vector<8x32xf32>
    %108 = arith.index_cast %c1_i32_48 : i32 to index
    %c0_51 = arith.constant 0 : index
    %c0_52 = arith.constant 0 : index
    %109 = vector.load %arg5[%108, %c0_51, %c0_52] : memref<4x32x8xf32, #tpu.memory_space<vmem>>, vector<1x32x8xf32>
    %110 = vector.shape_cast %109 : vector<1x32x8xf32> to vector<32x8xf32>
    %c0_53 = arith.constant 0 : index
    %c0_54 = arith.constant 0 : index
    %c0_55 = arith.constant 0 : index
    %c0_56 = arith.constant 0 : index
    %111 = vector.load %arg3[%c0_53, %c0_54, %c0_55, %c0_56] : memref<1x3x32x32xf32, #tpu.memory_space<vmem>>, vector<1x1x32x32xf32>
    %112 = vector.shape_cast %111 : vector<1x1x32x32xf32> to vector<32x32xf32>
    %cst_57 = arith.constant dense<0.000000e+00> : vector<8x32xf32>
    %113 = tpu.matmul %107, %112, %cst_57 {dimension_numbers = #tpu.dot_dimension_numbers<[1], [0], [0], [1], [0, 0, 1, 1], [], []>} : vector<8x32xf32>, vector<32x32xf32>, vector<8x32xf32> -> vector<8x32xf32>
    %cst_58 = arith.constant dense<0.000000e+00> : vector<8x8xf32>
    %114 = tpu.matmul %113, %110, %cst_58 {dimension_numbers = #tpu.dot_dimension_numbers<[1], [0], [0], [1], [0, 0, 1, 1], [], []>} : vector<8x32xf32>, vector<32x8xf32>, vector<8x8xf32> -> vector<8x8xf32>
    %c0_59 = arith.constant 0 : index
    %c1_60 = arith.constant 1 : index
    %c0_61 = arith.constant 0 : index
    %c0_62 = arith.constant 0 : index
    %115 = vector.load %arg3[%c0_59, %c1_60, %c0_61, %c0_62] : memref<1x3x32x32xf32, #tpu.memory_space<vmem>>, vector<1x1x32x32xf32>
    %116 = vector.shape_cast %115 : vector<1x1x32x32xf32> to vector<32x32xf32>
    %cst_63 = arith.constant dense<0.000000e+00> : vector<8x32xf32>
    %117 = tpu.matmul %107, %116, %cst_63 {dimension_numbers = #tpu.dot_dimension_numbers<[1], [0], [0], [1], [0, 0, 1, 1], [], []>} : vector<8x32xf32>, vector<32x32xf32>, vector<8x32xf32> -> vector<8x32xf32>
    %cst_64 = arith.constant dense<0.000000e+00> : vector<8x8xf32>
    %118 = tpu.matmul %117, %110, %cst_64 {dimension_numbers = #tpu.dot_dimension_numbers<[1], [0], [0], [1], [0, 0, 1, 1], [], []>} : vector<8x32xf32>, vector<32x8xf32>, vector<8x8xf32> -> vector<8x8xf32>
    %c0_65 = arith.constant 0 : index
    %c2_66 = arith.constant 2 : index
    %c0_67 = arith.constant 0 : index
    %c0_68 = arith.constant 0 : index
    %119 = vector.load %arg3[%c0_65, %c2_66, %c0_67, %c0_68] : memref<1x3x32x32xf32, #tpu.memory_space<vmem>>, vector<1x1x32x32xf32>
    %120 = vector.shape_cast %119 : vector<1x1x32x32xf32> to vector<32x32xf32>
    %cst_69 = arith.constant dense<0.000000e+00> : vector<8x32xf32>
    %121 = tpu.matmul %107, %120, %cst_69 {dimension_numbers = #tpu.dot_dimension_numbers<[1], [0], [0], [1], [0, 0, 1, 1], [], []>} : vector<8x32xf32>, vector<32x32xf32>, vector<8x32xf32> -> vector<8x32xf32>
    %cst_70 = arith.constant dense<0.000000e+00> : vector<8x8xf32>
    %122 = tpu.matmul %121, %110, %cst_70 {dimension_numbers = #tpu.dot_dimension_numbers<[1], [0], [0], [1], [0, 0, 1, 1], [], []>} : vector<8x32xf32>, vector<32x8xf32>, vector<8x8xf32> -> vector<8x8xf32>
    %c4_i32_71 = arith.constant 4 : i32
    %123 = arith.muli %arg0, %c4_i32_71 : i32
    %124 = arith.addi %123, %c1_i32_48 : i32
    %c9_i32_72 = arith.constant 9 : i32
    %125 = arith.muli %124, %c9_i32_72 : i32
    %126 = arith.index_cast %c1_i32_48 : i32 to index
    %c0_73 = arith.constant 0 : index
    %c0_74 = arith.constant 0 : index
    %c0_75 = arith.constant 0 : index
    %127 = vector.load %arg6[%126, %c0_73, %c0_74, %c0_75] : memref<4x1x24x8xf32, #tpu.memory_space<vmem>>, vector<1x1x8x8xf32>
    %128 = vector.shape_cast %127 : vector<1x1x8x8xf32> to vector<8x8xf32>
    %c0_i32_76 = arith.constant 0 : i32
    %129 = arith.addi %125, %c0_i32_76 : i32
    %c0_i32_77 = arith.constant 0 : i32
    %130 = arith.addi %129, %c0_i32_77 : i32
    %131 = arith.index_cast %130 : i32 to index
    %132 = memref.load %arg2[%131] : memref<72xf32, #tpu.memory_space<smem>>
    %133 = vector.broadcast %132 : f32 to vector<8x8xf32>
    %134 = arith.mulf %133, %114 : vector<8x8xf32>
    %135 = arith.addf %128, %134 : vector<8x8xf32>
    %c0_i32_78 = arith.constant 0 : i32
    %136 = arith.addi %125, %c0_i32_78 : i32
    %c1_i32_79 = arith.constant 1 : i32
    %137 = arith.addi %136, %c1_i32_79 : i32
    %138 = arith.index_cast %137 : i32 to index
    %139 = memref.load %arg2[%138] : memref<72xf32, #tpu.memory_space<smem>>
    %140 = vector.broadcast %139 : f32 to vector<8x8xf32>
    %141 = arith.mulf %140, %118 : vector<8x8xf32>
    %142 = arith.addf %135, %141 : vector<8x8xf32>
    %c0_i32_80 = arith.constant 0 : i32
    %143 = arith.addi %125, %c0_i32_80 : i32
    %c2_i32_81 = arith.constant 2 : i32
    %144 = arith.addi %143, %c2_i32_81 : i32
    %145 = arith.index_cast %144 : i32 to index
    %146 = memref.load %arg2[%145] : memref<72xf32, #tpu.memory_space<smem>>
    %147 = vector.broadcast %146 : f32 to vector<8x8xf32>
    %148 = arith.mulf %147, %122 : vector<8x8xf32>
    %149 = arith.addf %142, %148 : vector<8x8xf32>
    %150 = arith.index_cast %c1_i32_48 : i32 to index
    %c0_82 = arith.constant 0 : index
    %c0_83 = arith.constant 0 : index
    %c0_84 = arith.constant 0 : index
    %151 = vector.load %arg7[%150, %c0_82, %c0_83, %c0_84] : memref<4x1x24x8xf32, #tpu.memory_space<vmem>>, vector<1x1x8x8xf32>
    %152 = vector.shape_cast %151 : vector<1x1x8x8xf32> to vector<8x8xf32>
    %153 = vector.shape_cast %149 : vector<8x8xf32> to vector<1x1x8x8xf32>
    tpu.vector_store %arg7[%150, %c0_82, %c0_83, %c0_84], %153 {strides = array<i32>} : memref<4x1x24x8xf32, #tpu.memory_space<vmem>>, vector<1x1x8x8xf32>,
    %154 = arith.index_cast %c1_i32_48 : i32 to index
    %c0_85 = arith.constant 0 : index
    %c8_86 = arith.constant 8 : index
    %c0_87 = arith.constant 0 : index
    %155 = vector.load %arg6[%154, %c0_85, %c8_86, %c0_87] : memref<4x1x24x8xf32, #tpu.memory_space<vmem>>, vector<1x1x8x8xf32>
    %156 = vector.shape_cast %155 : vector<1x1x8x8xf32> to vector<8x8xf32>
    %c3_i32_88 = arith.constant 3 : i32
    %157 = arith.addi %125, %c3_i32_88 : i32
    %c0_i32_89 = arith.constant 0 : i32
    %158 = arith.addi %157, %c0_i32_89 : i32
    %159 = arith.index_cast %158 : i32 to index
    %160 = memref.load %arg2[%159] : memref<72xf32, #tpu.memory_space<smem>>
    %161 = vector.broadcast %160 : f32 to vector<8x8xf32>
    %162 = arith.mulf %161, %114 : vector<8x8xf32>
    %163 = arith.addf %156, %162 : vector<8x8xf32>
    %c3_i32_90 = arith.constant 3 : i32
    %164 = arith.addi %125, %c3_i32_90 : i32
    %c1_i32_91 = arith.constant 1 : i32
    %165 = arith.addi %164, %c1_i32_91 : i32
    %166 = arith.index_cast %165 : i32 to index
    %167 = memref.load %arg2[%166] : memref<72xf32, #tpu.memory_space<smem>>
    %168 = vector.broadcast %167 : f32 to vector<8x8xf32>
    %169 = arith.mulf %168, %118 : vector<8x8xf32>
    %170 = arith.addf %163, %169 : vector<8x8xf32>
    %c3_i32_92 = arith.constant 3 : i32
    %171 = arith.addi %125, %c3_i32_92 : i32
    %c2_i32_93 = arith.constant 2 : i32
    %172 = arith.addi %171, %c2_i32_93 : i32
    %173 = arith.index_cast %172 : i32 to index
    %174 = memref.load %arg2[%173] : memref<72xf32, #tpu.memory_space<smem>>
    %175 = vector.broadcast %174 : f32 to vector<8x8xf32>
    %176 = arith.mulf %175, %122 : vector<8x8xf32>
    %177 = arith.addf %170, %176 : vector<8x8xf32>
    %178 = arith.index_cast %c1_i32_48 : i32 to index
    %c0_94 = arith.constant 0 : index
    %c8_95 = arith.constant 8 : index
    %c0_96 = arith.constant 0 : index
    %179 = vector.load %arg7[%178, %c0_94, %c8_95, %c0_96] : memref<4x1x24x8xf32, #tpu.memory_space<vmem>>, vector<1x1x8x8xf32>
    %180 = vector.shape_cast %179 : vector<1x1x8x8xf32> to vector<8x8xf32>
    %181 = vector.shape_cast %177 : vector<8x8xf32> to vector<1x1x8x8xf32>
    tpu.vector_store %arg7[%178, %c0_94, %c8_95, %c0_96], %181 {strides = array<i32>} : memref<4x1x24x8xf32, #tpu.memory_space<vmem>>, vector<1x1x8x8xf32>,
    %182 = arith.index_cast %c1_i32_48 : i32 to index
    %c0_97 = arith.constant 0 : index
    %c16_98 = arith.constant 16 : index
    %c0_99 = arith.constant 0 : index
    %183 = vector.load %arg6[%182, %c0_97, %c16_98, %c0_99] : memref<4x1x24x8xf32, #tpu.memory_space<vmem>>, vector<1x1x8x8xf32>
    %184 = vector.shape_cast %183 : vector<1x1x8x8xf32> to vector<8x8xf32>
    %c6_i32_100 = arith.constant 6 : i32
    %185 = arith.addi %125, %c6_i32_100 : i32
    %c0_i32_101 = arith.constant 0 : i32
    %186 = arith.addi %185, %c0_i32_101 : i32
    %187 = arith.index_cast %186 : i32 to index
    %188 = memref.load %arg2[%187] : memref<72xf32, #tpu.memory_space<smem>>
    %189 = vector.broadcast %188 : f32 to vector<8x8xf32>
    %190 = arith.mulf %189, %114 : vector<8x8xf32>
    %191 = arith.addf %184, %190 : vector<8x8xf32>
    %c6_i32_102 = arith.constant 6 : i32
    %192 = arith.addi %125, %c6_i32_102 : i32
    %c1_i32_103 = arith.constant 1 : i32
    %193 = arith.addi %192, %c1_i32_103 : i32
    %194 = arith.index_cast %193 : i32 to index
    %195 = memref.load %arg2[%194] : memref<72xf32, #tpu.memory_space<smem>>
    %196 = vector.broadcast %195 : f32 to vector<8x8xf32>
    %197 = arith.mulf %196, %118 : vector<8x8xf32>
    %198 = arith.addf %191, %197 : vector<8x8xf32>
    %c6_i32_104 = arith.constant 6 : i32
    %199 = arith.addi %125, %c6_i32_104 : i32
    %c2_i32_105 = arith.constant 2 : i32
    %200 = arith.addi %199, %c2_i32_105 : i32
    %201 = arith.index_cast %200 : i32 to index
    %202 = memref.load %arg2[%201] : memref<72xf32, #tpu.memory_space<smem>>
    %203 = vector.broadcast %202 : f32 to vector<8x8xf32>
    %204 = arith.mulf %203, %122 : vector<8x8xf32>
    %205 = arith.addf %198, %204 : vector<8x8xf32>
    %206 = arith.index_cast %c1_i32_48 : i32 to index
    %c0_106 = arith.constant 0 : index
    %c16_107 = arith.constant 16 : index
    %c0_108 = arith.constant 0 : index
    %207 = vector.load %arg7[%206, %c0_106, %c16_107, %c0_108] : memref<4x1x24x8xf32, #tpu.memory_space<vmem>>, vector<1x1x8x8xf32>
    %208 = vector.shape_cast %207 : vector<1x1x8x8xf32> to vector<8x8xf32>
    %209 = vector.shape_cast %205 : vector<8x8xf32> to vector<1x1x8x8xf32>
    tpu.vector_store %arg7[%206, %c0_106, %c16_107, %c0_108], %209 {strides = array<i32>} : memref<4x1x24x8xf32, #tpu.memory_space<vmem>>, vector<1x1x8x8xf32>,
    %c2_i32_109 = arith.constant 2 : i32
    %210 = arith.index_cast %c2_i32_109 : i32 to index
    %c0_110 = arith.constant 0 : index
    %c0_111 = arith.constant 0 : index
    %211 = vector.load %arg4[%210, %c0_110, %c0_111] : memref<4x8x32xf32, #tpu.memory_space<vmem>>, vector<1x8x32xf32>
    %212 = vector.shape_cast %211 : vector<1x8x32xf32> to vector<8x32xf32>
    %213 = arith.index_cast %c2_i32_109 : i32 to index
    %c0_112 = arith.constant 0 : index
    %c0_113 = arith.constant 0 : index
    %214 = vector.load %arg5[%213, %c0_112, %c0_113] : memref<4x32x8xf32, #tpu.memory_space<vmem>>, vector<1x32x8xf32>
    %215 = vector.shape_cast %214 : vector<1x32x8xf32> to vector<32x8xf32>
    %c0_114 = arith.constant 0 : index
    %c0_115 = arith.constant 0 : index
    %c0_116 = arith.constant 0 : index
    %c0_117 = arith.constant 0 : index
    %216 = vector.load %arg3[%c0_114, %c0_115, %c0_116, %c0_117] : memref<1x3x32x32xf32, #tpu.memory_space<vmem>>, vector<1x1x32x32xf32>
    %217 = vector.shape_cast %216 : vector<1x1x32x32xf32> to vector<32x32xf32>
    %cst_118 = arith.constant dense<0.000000e+00> : vector<8x32xf32>
    %218 = tpu.matmul %212, %217, %cst_118 {dimension_numbers = #tpu.dot_dimension_numbers<[1], [0], [0], [1], [0, 0, 1, 1], [], []>} : vector<8x32xf32>, vector<32x32xf32>, vector<8x32xf32> -> vector<8x32xf32>
    %cst_119 = arith.constant dense<0.000000e+00> : vector<8x8xf32>
    %219 = tpu.matmul %218, %215, %cst_119 {dimension_numbers = #tpu.dot_dimension_numbers<[1], [0], [0], [1], [0, 0, 1, 1], [], []>} : vector<8x32xf32>, vector<32x8xf32>, vector<8x8xf32> -> vector<8x8xf32>
    %c0_120 = arith.constant 0 : index
    %c1_121 = arith.constant 1 : index
    %c0_122 = arith.constant 0 : index
    %c0_123 = arith.constant 0 : index
    %220 = vector.load %arg3[%c0_120, %c1_121, %c0_122, %c0_123] : memref<1x3x32x32xf32, #tpu.memory_space<vmem>>, vector<1x1x32x32xf32>
    %221 = vector.shape_cast %220 : vector<1x1x32x32xf32> to vector<32x32xf32>
    %cst_124 = arith.constant dense<0.000000e+00> : vector<8x32xf32>
    %222 = tpu.matmul %212, %221, %cst_124 {dimension_numbers = #tpu.dot_dimension_numbers<[1], [0], [0], [1], [0, 0, 1, 1], [], []>} : vector<8x32xf32>, vector<32x32xf32>, vector<8x32xf32> -> vector<8x32xf32>
    %cst_125 = arith.constant dense<0.000000e+00> : vector<8x8xf32>
    %223 = tpu.matmul %222, %215, %cst_125 {dimension_numbers = #tpu.dot_dimension_numbers<[1], [0], [0], [1], [0, 0, 1, 1], [], []>} : vector<8x32xf32>, vector<32x8xf32>, vector<8x8xf32> -> vector<8x8xf32>
    %c0_126 = arith.constant 0 : index
    %c2_127 = arith.constant 2 : index
    %c0_128 = arith.constant 0 : index
    %c0_129 = arith.constant 0 : index
    %224 = vector.load %arg3[%c0_126, %c2_127, %c0_128, %c0_129] : memref<1x3x32x32xf32, #tpu.memory_space<vmem>>, vector<1x1x32x32xf32>
    %225 = vector.shape_cast %224 : vector<1x1x32x32xf32> to vector<32x32xf32>
    %cst_130 = arith.constant dense<0.000000e+00> : vector<8x32xf32>
    %226 = tpu.matmul %212, %225, %cst_130 {dimension_numbers = #tpu.dot_dimension_numbers<[1], [0], [0], [1], [0, 0, 1, 1], [], []>} : vector<8x32xf32>, vector<32x32xf32>, vector<8x32xf32> -> vector<8x32xf32>
    %cst_131 = arith.constant dense<0.000000e+00> : vector<8x8xf32>
    %227 = tpu.matmul %226, %215, %cst_131 {dimension_numbers = #tpu.dot_dimension_numbers<[1], [0], [0], [1], [0, 0, 1, 1], [], []>} : vector<8x32xf32>, vector<32x8xf32>, vector<8x8xf32> -> vector<8x8xf32>
    %c4_i32_132 = arith.constant 4 : i32
    %228 = arith.muli %arg0, %c4_i32_132 : i32
    %229 = arith.addi %228, %c2_i32_109 : i32
    %c9_i32_133 = arith.constant 9 : i32
    %230 = arith.muli %229, %c9_i32_133 : i32
    %231 = arith.index_cast %c2_i32_109 : i32 to index
    %c0_134 = arith.constant 0 : index
    %c0_135 = arith.constant 0 : index
    %c0_136 = arith.constant 0 : index
    %232 = vector.load %arg6[%231, %c0_134, %c0_135, %c0_136] : memref<4x1x24x8xf32, #tpu.memory_space<vmem>>, vector<1x1x8x8xf32>
    %233 = vector.shape_cast %232 : vector<1x1x8x8xf32> to vector<8x8xf32>
    %c0_i32_137 = arith.constant 0 : i32
    %234 = arith.addi %230, %c0_i32_137 : i32
    %c0_i32_138 = arith.constant 0 : i32
    %235 = arith.addi %234, %c0_i32_138 : i32
    %236 = arith.index_cast %235 : i32 to index
    %237 = memref.load %arg2[%236] : memref<72xf32, #tpu.memory_space<smem>>
    %238 = vector.broadcast %237 : f32 to vector<8x8xf32>
    %239 = arith.mulf %238, %219 : vector<8x8xf32>
    %240 = arith.addf %233, %239 : vector<8x8xf32>
    %c0_i32_139 = arith.constant 0 : i32
    %241 = arith.addi %230, %c0_i32_139 : i32
    %c1_i32_140 = arith.constant 1 : i32
    %242 = arith.addi %241, %c1_i32_140 : i32
    %243 = arith.index_cast %242 : i32 to index
    %244 = memref.load %arg2[%243] : memref<72xf32, #tpu.memory_space<smem>>
    %245 = vector.broadcast %244 : f32 to vector<8x8xf32>
    %246 = arith.mulf %245, %223 : vector<8x8xf32>
    %247 = arith.addf %240, %246 : vector<8x8xf32>
    %c0_i32_141 = arith.constant 0 : i32
    %248 = arith.addi %230, %c0_i32_141 : i32
    %c2_i32_142 = arith.constant 2 : i32
    %249 = arith.addi %248, %c2_i32_142 : i32
    %250 = arith.index_cast %249 : i32 to index
    %251 = memref.load %arg2[%250] : memref<72xf32, #tpu.memory_space<smem>>
    %252 = vector.broadcast %251 : f32 to vector<8x8xf32>
    %253 = arith.mulf %252, %227 : vector<8x8xf32>
    %254 = arith.addf %247, %253 : vector<8x8xf32>
    %255 = arith.index_cast %c2_i32_109 : i32 to index
    %c0_143 = arith.constant 0 : index
    %c0_144 = arith.constant 0 : index
    %c0_145 = arith.constant 0 : index
    %256 = vector.load %arg7[%255, %c0_143, %c0_144, %c0_145] : memref<4x1x24x8xf32, #tpu.memory_space<vmem>>, vector<1x1x8x8xf32>
    %257 = vector.shape_cast %256 : vector<1x1x8x8xf32> to vector<8x8xf32>
    %258 = vector.shape_cast %254 : vector<8x8xf32> to vector<1x1x8x8xf32>
    tpu.vector_store %arg7[%255, %c0_143, %c0_144, %c0_145], %258 {strides = array<i32>} : memref<4x1x24x8xf32, #tpu.memory_space<vmem>>, vector<1x1x8x8xf32>,
    %259 = arith.index_cast %c2_i32_109 : i32 to index
    %c0_146 = arith.constant 0 : index
    %c8_147 = arith.constant 8 : index
    %c0_148 = arith.constant 0 : index
    %260 = vector.load %arg6[%259, %c0_146, %c8_147, %c0_148] : memref<4x1x24x8xf32, #tpu.memory_space<vmem>>, vector<1x1x8x8xf32>
    %261 = vector.shape_cast %260 : vector<1x1x8x8xf32> to vector<8x8xf32>
    %c3_i32_149 = arith.constant 3 : i32
    %262 = arith.addi %230, %c3_i32_149 : i32
    %c0_i32_150 = arith.constant 0 : i32
    %263 = arith.addi %262, %c0_i32_150 : i32
    %264 = arith.index_cast %263 : i32 to index
    %265 = memref.load %arg2[%264] : memref<72xf32, #tpu.memory_space<smem>>
    %266 = vector.broadcast %265 : f32 to vector<8x8xf32>
    %267 = arith.mulf %266, %219 : vector<8x8xf32>
    %268 = arith.addf %261, %267 : vector<8x8xf32>
    %c3_i32_151 = arith.constant 3 : i32
    %269 = arith.addi %230, %c3_i32_151 : i32
    %c1_i32_152 = arith.constant 1 : i32
    %270 = arith.addi %269, %c1_i32_152 : i32
    %271 = arith.index_cast %270 : i32 to index
    %272 = memref.load %arg2[%271] : memref<72xf32, #tpu.memory_space<smem>>
    %273 = vector.broadcast %272 : f32 to vector<8x8xf32>
    %274 = arith.mulf %273, %223 : vector<8x8xf32>
    %275 = arith.addf %268, %274 : vector<8x8xf32>
    %c3_i32_153 = arith.constant 3 : i32
    %276 = arith.addi %230, %c3_i32_153 : i32
    %c2_i32_154 = arith.constant 2 : i32
    %277 = arith.addi %276, %c2_i32_154 : i32
    %278 = arith.index_cast %277 : i32 to index
    %279 = memref.load %arg2[%278] : memref<72xf32, #tpu.memory_space<smem>>
    %280 = vector.broadcast %279 : f32 to vector<8x8xf32>
    %281 = arith.mulf %280, %227 : vector<8x8xf32>
    %282 = arith.addf %275, %281 : vector<8x8xf32>
    %283 = arith.index_cast %c2_i32_109 : i32 to index
    %c0_155 = arith.constant 0 : index
    %c8_156 = arith.constant 8 : index
    %c0_157 = arith.constant 0 : index
    %284 = vector.load %arg7[%283, %c0_155, %c8_156, %c0_157] : memref<4x1x24x8xf32, #tpu.memory_space<vmem>>, vector<1x1x8x8xf32>
    %285 = vector.shape_cast %284 : vector<1x1x8x8xf32> to vector<8x8xf32>
    %286 = vector.shape_cast %282 : vector<8x8xf32> to vector<1x1x8x8xf32>
    tpu.vector_store %arg7[%283, %c0_155, %c8_156, %c0_157], %286 {strides = array<i32>} : memref<4x1x24x8xf32, #tpu.memory_space<vmem>>, vector<1x1x8x8xf32>,
    %287 = arith.index_cast %c2_i32_109 : i32 to index
    %c0_158 = arith.constant 0 : index
    %c16_159 = arith.constant 16 : index
    %c0_160 = arith.constant 0 : index
    %288 = vector.load %arg6[%287, %c0_158, %c16_159, %c0_160] : memref<4x1x24x8xf32, #tpu.memory_space<vmem>>, vector<1x1x8x8xf32>
    %289 = vector.shape_cast %288 : vector<1x1x8x8xf32> to vector<8x8xf32>
    %c6_i32_161 = arith.constant 6 : i32
    %290 = arith.addi %230, %c6_i32_161 : i32
    %c0_i32_162 = arith.constant 0 : i32
    %291 = arith.addi %290, %c0_i32_162 : i32
    %292 = arith.index_cast %291 : i32 to index
    %293 = memref.load %arg2[%292] : memref<72xf32, #tpu.memory_space<smem>>
    %294 = vector.broadcast %293 : f32 to vector<8x8xf32>
    %295 = arith.mulf %294, %219 : vector<8x8xf32>
    %296 = arith.addf %289, %295 : vector<8x8xf32>
    %c6_i32_163 = arith.constant 6 : i32
    %297 = arith.addi %230, %c6_i32_163 : i32
    %c1_i32_164 = arith.constant 1 : i32
    %298 = arith.addi %297, %c1_i32_164 : i32
    %299 = arith.index_cast %298 : i32 to index
    %300 = memref.load %arg2[%299] : memref<72xf32, #tpu.memory_space<smem>>
    %301 = vector.broadcast %300 : f32 to vector<8x8xf32>
    %302 = arith.mulf %301, %223 : vector<8x8xf32>
    %303 = arith.addf %296, %302 : vector<8x8xf32>
    %c6_i32_165 = arith.constant 6 : i32
    %304 = arith.addi %230, %c6_i32_165 : i32
    %c2_i32_166 = arith.constant 2 : i32
    %305 = arith.addi %304, %c2_i32_166 : i32
    %306 = arith.index_cast %305 : i32 to index
    %307 = memref.load %arg2[%306] : memref<72xf32, #tpu.memory_space<smem>>
    %308 = vector.broadcast %307 : f32 to vector<8x8xf32>
    %309 = arith.mulf %308, %227 : vector<8x8xf32>
    %310 = arith.addf %303, %309 : vector<8x8xf32>
    %311 = arith.index_cast %c2_i32_109 : i32 to index
    %c0_167 = arith.constant 0 : index
    %c16_168 = arith.constant 16 : index
    %c0_169 = arith.constant 0 : index
    %312 = vector.load %arg7[%311, %c0_167, %c16_168, %c0_169] : memref<4x1x24x8xf32, #tpu.memory_space<vmem>>, vector<1x1x8x8xf32>
    %313 = vector.shape_cast %312 : vector<1x1x8x8xf32> to vector<8x8xf32>
    %314 = vector.shape_cast %310 : vector<8x8xf32> to vector<1x1x8x8xf32>
    tpu.vector_store %arg7[%311, %c0_167, %c16_168, %c0_169], %314 {strides = array<i32>} : memref<4x1x24x8xf32, #tpu.memory_space<vmem>>, vector<1x1x8x8xf32>,
    %c3_i32_170 = arith.constant 3 : i32
    %315 = arith.index_cast %c3_i32_170 : i32 to index
    %c0_171 = arith.constant 0 : index
    %c0_172 = arith.constant 0 : index
    %316 = vector.load %arg4[%315, %c0_171, %c0_172] : memref<4x8x32xf32, #tpu.memory_space<vmem>>, vector<1x8x32xf32>
    %317 = vector.shape_cast %316 : vector<1x8x32xf32> to vector<8x32xf32>
    %318 = arith.index_cast %c3_i32_170 : i32 to index
    %c0_173 = arith.constant 0 : index
    %c0_174 = arith.constant 0 : index
    %319 = vector.load %arg5[%318, %c0_173, %c0_174] : memref<4x32x8xf32, #tpu.memory_space<vmem>>, vector<1x32x8xf32>
    %320 = vector.shape_cast %319 : vector<1x32x8xf32> to vector<32x8xf32>
    %c0_175 = arith.constant 0 : index
    %c0_176 = arith.constant 0 : index
    %c0_177 = arith.constant 0 : index
    %c0_178 = arith.constant 0 : index
    %321 = vector.load %arg3[%c0_175, %c0_176, %c0_177, %c0_178] : memref<1x3x32x32xf32, #tpu.memory_space<vmem>>, vector<1x1x32x32xf32>
    %322 = vector.shape_cast %321 : vector<1x1x32x32xf32> to vector<32x32xf32>
    %cst_179 = arith.constant dense<0.000000e+00> : vector<8x32xf32>
    %323 = tpu.matmul %317, %322, %cst_179 {dimension_numbers = #tpu.dot_dimension_numbers<[1], [0], [0], [1], [0, 0, 1, 1], [], []>} : vector<8x32xf32>, vector<32x32xf32>, vector<8x32xf32> -> vector<8x32xf32>
    %cst_180 = arith.constant dense<0.000000e+00> : vector<8x8xf32>
    %324 = tpu.matmul %323, %320, %cst_180 {dimension_numbers = #tpu.dot_dimension_numbers<[1], [0], [0], [1], [0, 0, 1, 1], [], []>} : vector<8x32xf32>, vector<32x8xf32>, vector<8x8xf32> -> vector<8x8xf32>
    %c0_181 = arith.constant 0 : index
    %c1_182 = arith.constant 1 : index
    %c0_183 = arith.constant 0 : index
    %c0_184 = arith.constant 0 : index
    %325 = vector.load %arg3[%c0_181, %c1_182, %c0_183, %c0_184] : memref<1x3x32x32xf32, #tpu.memory_space<vmem>>, vector<1x1x32x32xf32>
    %326 = vector.shape_cast %325 : vector<1x1x32x32xf32> to vector<32x32xf32>
    %cst_185 = arith.constant dense<0.000000e+00> : vector<8x32xf32>
    %327 = tpu.matmul %317, %326, %cst_185 {dimension_numbers = #tpu.dot_dimension_numbers<[1], [0], [0], [1], [0, 0, 1, 1], [], []>} : vector<8x32xf32>, vector<32x32xf32>, vector<8x32xf32> -> vector<8x32xf32>
    %cst_186 = arith.constant dense<0.000000e+00> : vector<8x8xf32>
    %328 = tpu.matmul %327, %320, %cst_186 {dimension_numbers = #tpu.dot_dimension_numbers<[1], [0], [0], [1], [0, 0, 1, 1], [], []>} : vector<8x32xf32>, vector<32x8xf32>, vector<8x8xf32> -> vector<8x8xf32>
    %c0_187 = arith.constant 0 : index
    %c2_188 = arith.constant 2 : index
    %c0_189 = arith.constant 0 : index
    %c0_190 = arith.constant 0 : index
    %329 = vector.load %arg3[%c0_187, %c2_188, %c0_189, %c0_190] : memref<1x3x32x32xf32, #tpu.memory_space<vmem>>, vector<1x1x32x32xf32>
    %330 = vector.shape_cast %329 : vector<1x1x32x32xf32> to vector<32x32xf32>
    %cst_191 = arith.constant dense<0.000000e+00> : vector<8x32xf32>
    %331 = tpu.matmul %317, %330, %cst_191 {dimension_numbers = #tpu.dot_dimension_numbers<[1], [0], [0], [1], [0, 0, 1, 1], [], []>} : vector<8x32xf32>, vector<32x32xf32>, vector<8x32xf32> -> vector<8x32xf32>
    %cst_192 = arith.constant dense<0.000000e+00> : vector<8x8xf32>
    %332 = tpu.matmul %331, %320, %cst_192 {dimension_numbers = #tpu.dot_dimension_numbers<[1], [0], [0], [1], [0, 0, 1, 1], [], []>} : vector<8x32xf32>, vector<32x8xf32>, vector<8x8xf32> -> vector<8x8xf32>
    %c4_i32_193 = arith.constant 4 : i32
    %333 = arith.muli %arg0, %c4_i32_193 : i32
    %334 = arith.addi %333, %c3_i32_170 : i32
    %c9_i32_194 = arith.constant 9 : i32
    %335 = arith.muli %334, %c9_i32_194 : i32
    %336 = arith.index_cast %c3_i32_170 : i32 to index
    %c0_195 = arith.constant 0 : index
    %c0_196 = arith.constant 0 : index
    %c0_197 = arith.constant 0 : index
    %337 = vector.load %arg6[%336, %c0_195, %c0_196, %c0_197] : memref<4x1x24x8xf32, #tpu.memory_space<vmem>>, vector<1x1x8x8xf32>
    %338 = vector.shape_cast %337 : vector<1x1x8x8xf32> to vector<8x8xf32>
    %c0_i32_198 = arith.constant 0 : i32
    %339 = arith.addi %335, %c0_i32_198 : i32
    %c0_i32_199 = arith.constant 0 : i32
    %340 = arith.addi %339, %c0_i32_199 : i32
    %341 = arith.index_cast %340 : i32 to index
    %342 = memref.load %arg2[%341] : memref<72xf32, #tpu.memory_space<smem>>
    %343 = vector.broadcast %342 : f32 to vector<8x8xf32>
    %344 = arith.mulf %343, %324 : vector<8x8xf32>
    %345 = arith.addf %338, %344 : vector<8x8xf32>
    %c0_i32_200 = arith.constant 0 : i32
    %346 = arith.addi %335, %c0_i32_200 : i32
    %c1_i32_201 = arith.constant 1 : i32
    %347 = arith.addi %346, %c1_i32_201 : i32
    %348 = arith.index_cast %347 : i32 to index
    %349 = memref.load %arg2[%348] : memref<72xf32, #tpu.memory_space<smem>>
    %350 = vector.broadcast %349 : f32 to vector<8x8xf32>
    %351 = arith.mulf %350, %328 : vector<8x8xf32>
    %352 = arith.addf %345, %351 : vector<8x8xf32>
    %c0_i32_202 = arith.constant 0 : i32
    %353 = arith.addi %335, %c0_i32_202 : i32
    %c2_i32_203 = arith.constant 2 : i32
    %354 = arith.addi %353, %c2_i32_203 : i32
    %355 = arith.index_cast %354 : i32 to index
    %356 = memref.load %arg2[%355] : memref<72xf32, #tpu.memory_space<smem>>
    %357 = vector.broadcast %356 : f32 to vector<8x8xf32>
    %358 = arith.mulf %357, %332 : vector<8x8xf32>
    %359 = arith.addf %352, %358 : vector<8x8xf32>
    %360 = arith.index_cast %c3_i32_170 : i32 to index
    %c0_204 = arith.constant 0 : index
    %c0_205 = arith.constant 0 : index
    %c0_206 = arith.constant 0 : index
    %361 = vector.load %arg7[%360, %c0_204, %c0_205, %c0_206] : memref<4x1x24x8xf32, #tpu.memory_space<vmem>>, vector<1x1x8x8xf32>
    %362 = vector.shape_cast %361 : vector<1x1x8x8xf32> to vector<8x8xf32>
    %363 = vector.shape_cast %359 : vector<8x8xf32> to vector<1x1x8x8xf32>
    tpu.vector_store %arg7[%360, %c0_204, %c0_205, %c0_206], %363 {strides = array<i32>} : memref<4x1x24x8xf32, #tpu.memory_space<vmem>>, vector<1x1x8x8xf32>,
    %364 = arith.index_cast %c3_i32_170 : i32 to index
    %c0_207 = arith.constant 0 : index
    %c8_208 = arith.constant 8 : index
    %c0_209 = arith.constant 0 : index
    %365 = vector.load %arg6[%364, %c0_207, %c8_208, %c0_209] : memref<4x1x24x8xf32, #tpu.memory_space<vmem>>, vector<1x1x8x8xf32>
    %366 = vector.shape_cast %365 : vector<1x1x8x8xf32> to vector<8x8xf32>
    %c3_i32_210 = arith.constant 3 : i32
    %367 = arith.addi %335, %c3_i32_210 : i32
    %c0_i32_211 = arith.constant 0 : i32
    %368 = arith.addi %367, %c0_i32_211 : i32
    %369 = arith.index_cast %368 : i32 to index
    %370 = memref.load %arg2[%369] : memref<72xf32, #tpu.memory_space<smem>>
    %371 = vector.broadcast %370 : f32 to vector<8x8xf32>
    %372 = arith.mulf %371, %324 : vector<8x8xf32>
    %373 = arith.addf %366, %372 : vector<8x8xf32>
    %c3_i32_212 = arith.constant 3 : i32
    %374 = arith.addi %335, %c3_i32_212 : i32
    %c1_i32_213 = arith.constant 1 : i32
    %375 = arith.addi %374, %c1_i32_213 : i32
    %376 = arith.index_cast %375 : i32 to index
    %377 = memref.load %arg2[%376] : memref<72xf32, #tpu.memory_space<smem>>
    %378 = vector.broadcast %377 : f32 to vector<8x8xf32>
    %379 = arith.mulf %378, %328 : vector<8x8xf32>
    %380 = arith.addf %373, %379 : vector<8x8xf32>
    %c3_i32_214 = arith.constant 3 : i32
    %381 = arith.addi %335, %c3_i32_214 : i32
    %c2_i32_215 = arith.constant 2 : i32
    %382 = arith.addi %381, %c2_i32_215 : i32
    %383 = arith.index_cast %382 : i32 to index
    %384 = memref.load %arg2[%383] : memref<72xf32, #tpu.memory_space<smem>>
    %385 = vector.broadcast %384 : f32 to vector<8x8xf32>
    %386 = arith.mulf %385, %332 : vector<8x8xf32>
    %387 = arith.addf %380, %386 : vector<8x8xf32>
    %388 = arith.index_cast %c3_i32_170 : i32 to index
    %c0_216 = arith.constant 0 : index
    %c8_217 = arith.constant 8 : index
    %c0_218 = arith.constant 0 : index
    %389 = vector.load %arg7[%388, %c0_216, %c8_217, %c0_218] : memref<4x1x24x8xf32, #tpu.memory_space<vmem>>, vector<1x1x8x8xf32>
    %390 = vector.shape_cast %389 : vector<1x1x8x8xf32> to vector<8x8xf32>
    %391 = vector.shape_cast %387 : vector<8x8xf32> to vector<1x1x8x8xf32>
    tpu.vector_store %arg7[%388, %c0_216, %c8_217, %c0_218], %391 {strides = array<i32>} : memref<4x1x24x8xf32, #tpu.memory_space<vmem>>, vector<1x1x8x8xf32>,
    %392 = arith.index_cast %c3_i32_170 : i32 to index
    %c0_219 = arith.constant 0 : index
    %c16_220 = arith.constant 16 : index
    %c0_221 = arith.constant 0 : index
    %393 = vector.load %arg6[%392, %c0_219, %c16_220, %c0_221] : memref<4x1x24x8xf32, #tpu.memory_space<vmem>>, vector<1x1x8x8xf32>
    %394 = vector.shape_cast %393 : vector<1x1x8x8xf32> to vector<8x8xf32>
    %c6_i32_222 = arith.constant 6 : i32
    %395 = arith.addi %335, %c6_i32_222 : i32
    %c0_i32_223 = arith.constant 0 : i32
    %396 = arith.addi %395, %c0_i32_223 : i32
    %397 = arith.index_cast %396 : i32 to index
    %398 = memref.load %arg2[%397] : memref<72xf32, #tpu.memory_space<smem>>
    %399 = vector.broadcast %398 : f32 to vector<8x8xf32>
    %400 = arith.mulf %399, %324 : vector<8x8xf32>
    %401 = arith.addf %394, %400 : vector<8x8xf32>
    %c6_i32_224 = arith.constant 6 : i32
    %402 = arith.addi %335, %c6_i32_224 : i32
    %c1_i32_225 = arith.constant 1 : i32
    %403 = arith.addi %402, %c1_i32_225 : i32
    %404 = arith.index_cast %403 : i32 to index
    %405 = memref.load %arg2[%404] : memref<72xf32, #tpu.memory_space<smem>>
    %406 = vector.broadcast %405 : f32 to vector<8x8xf32>
    %407 = arith.mulf %406, %328 : vector<8x8xf32>
    %408 = arith.addf %401, %407 : vector<8x8xf32>
    %c6_i32_226 = arith.constant 6 : i32
    %409 = arith.addi %335, %c6_i32_226 : i32
    %c2_i32_227 = arith.constant 2 : i32
    %410 = arith.addi %409, %c2_i32_227 : i32
    %411 = arith.index_cast %410 : i32 to index
    %412 = memref.load %arg2[%411] : memref<72xf32, #tpu.memory_space<smem>>
    %413 = vector.broadcast %412 : f32 to vector<8x8xf32>
    %414 = arith.mulf %413, %332 : vector<8x8xf32>
    %415 = arith.addf %408, %414 : vector<8x8xf32>
    %416 = arith.index_cast %c3_i32_170 : i32 to index
    %c0_228 = arith.constant 0 : index
    %c16_229 = arith.constant 16 : index
    %c0_230 = arith.constant 0 : index
    %417 = vector.load %arg7[%416, %c0_228, %c16_229, %c0_230] : memref<4x1x24x8xf32, #tpu.memory_space<vmem>>, vector<1x1x8x8xf32>
    %418 = vector.shape_cast %417 : vector<1x1x8x8xf32> to vector<8x8xf32>
    %419 = vector.shape_cast %415 : vector<8x8xf32> to vector<1x1x8x8xf32>
    tpu.vector_store %arg7[%416, %c0_228, %c16_229, %c0_230], %419 {strides = array<i32>} : memref<4x1x24x8xf32, #tpu.memory_space<vmem>>, vector<1x1x8x8xf32>,
    %c4_i32_231 = arith.constant 4 : i32
    return
  }
  func.func @transform_0(%arg0: i32, %arg1: i32, %arg2: memref<72xf32, #tpu.memory_space<smem>>) -> (i32, i32, i32, i32) {
    %c0_i32 = arith.constant 0 : i32
    %c0_i32_0 = arith.constant 0 : i32
    %c0_i32_1 = arith.constant 0 : i32
    %c0_i32_2 = arith.constant 0 : i32
    return %arg1, %c0_i32, %c0_i32_0, %c0_i32_1 : i32, i32, i32, i32
  }
  func.func @transform_1(%arg0: i32, %arg1: i32, %arg2: memref<72xf32, #tpu.memory_space<smem>>) -> (i32, i32, i32) {
    %c0_i32 = arith.constant 0 : i32
    %c0_i32_0 = arith.constant 0 : i32
    %c0_i32_1 = arith.constant 0 : i32
    return %arg0, %c0_i32, %c0_i32_0 : i32, i32, i32
  }
  func.func @transform_2(%arg0: i32, %arg1: i32, %arg2: memref<72xf32, #tpu.memory_space<smem>>) -> (i32, i32, i32) {
    %c0_i32 = arith.constant 0 : i32
    %c0_i32_0 = arith.constant 0 : i32
    %c0_i32_1 = arith.constant 0 : i32
    return %arg0, %c0_i32, %c0_i32_0 : i32, i32, i32
  }
  func.func @transform_3(%arg0: i32, %arg1: i32, %arg2: memref<72xf32, #tpu.memory_space<smem>>) -> (i32, i32, i32, i32) {
    %c0_i32 = arith.constant 0 : i32
    %c0_i32_0 = arith.constant 0 : i32
    %c0_i32_1 = arith.constant 0 : i32
    return %arg0, %arg1, %c0_i32, %c0_i32_0 : i32, i32, i32, i32
  }
  func.func @transform_4(%arg0: i32, %arg1: i32, %arg2: memref<72xf32, #tpu.memory_space<smem>>) -> (i32, i32, i32, i32) {
    %c0_i32 = arith.constant 0 : i32
    %c0_i32_0 = arith.constant 0 : i32
    %c0_i32_1 = arith.constant 0 : i32
    return %arg0, %arg1, %c0_i32, %c0_i32_0 : i32, i32, i32, i32
  }
}

</mosaic_0001>

<bundles_post_ra>
// kernel: fwd.1
= control target key start
LH: loop header
LB: loop body
LE: loop exit
PB: predicated region body
PF: predicated region fallthrough
CT: control target
= control target key end

     0   :  { %s3817_s0 = inlined_call_operand.vmem [shape: f32[72], index: 0, kind: input, shape index: {}]   ;;  %s3818_s1 = inlined_call_operand.vmem [shape: f32[2,3,32,32], index: 1, kind: input, shape index: {}]   ;;  %s3819_s2 = inlined_call_operand.vmem [shape: f32[8,8,32], index: 2, kind: input, shape index: {}]   ;;  %s3820_s3 = inlined_call_operand.vmem [shape: f32[8,32,8], index: 3, kind: input, shape index: {}]   ;;  %s3821_s4 = inlined_call_operand.vmem [shape: f32[8,2,24,8], index: 4, kind: input, shape index: {}]   ;;  %s3822_s5 = inlined_call_operand.vmem [shape: f32[8,2,24,8], index: 5, kind: output, shape index: {}]  }
   0x1   :  { %3823 = sst [smem:[#allocation7_spill]] %s3818_s1  ;;  %s10_s20 = sshll.u32 %s3817_s0, 4  ;;  %s11_s20 = int_to_ptr.vmem [resolvable:$true] %s10_s20 }
   0x2   :  { %3824 = sst [smem:[#allocation8_spill]] %s3819_s2  ;;  %s3296_s21 = scalar_lea.vmem %s11_s20, 16 }
   0x3   :  { %p3297_p0 = scmp.ne.s32.totalorder %s11_s20, %s3296_s21  ;;  %p3301_p1 = scmp.lt.s32.totalorder %s11_s20, %s11_s20 }
   0x4   :  { %p3302_p2 = scmp.lt.s32.totalorder %s3296_s21, %s3296_s21 }
   0x6   :  { %p3303_p3 = por %p3302_p2, %p3301_p1 }
   0x8   :  { %p3304_p4 = pnand %p3303_p3, %p3297_p0 }
   0xa   :  { %3307 = shalt.err (!%p3304_p4)  }
   0xb   :  { %s3366_s22 = smov [#allocation3]  }
   0xc   :  { %13 = dma.vmem_to_smem %s11_s20, 16, %s3366_s22, [#allocation2] }
   0xd   :  { %3336 = dma.done.wait [#allocation2], 16 }
   0xe   :  { %3337 = vsyncadd [#allocation2], 4294967280 }
   0xf   :  { %15 = sfence }
  0x10   :  { %s3403_s23 = smov 0   ;;  %s3405_s24 = smov 0  }
  0x11   :  { %s3407_s25 = smov 0   ;;  %s3409_s0 = smov 0  }
  0x12   :  { %s3411_s26 = smov 0   ;;  %s3413_s27 = smov 0  }
  0x13   :  { %s3415_s28 = smov 0  }
  0x14 LB: > { %s30_s29 = sadd.s32 1, %s3356_s26  ;;  %s33_s30 = sadd.s32 1, %s3360_s27  ;;  %s3364_s28 = sphi %s3415_s28, %s21_s28   ;;  %s3360_s27 = sphi %s3413_s27, %s3833_s27   ;;  %s3356_s26 = sphi %s3411_s26, %s3832_s26   ;;  %s3352_s0 = sphi %s3409_s0, %s3831_s0   ;;  %s3348_s25 = sphi %s3407_s25, %s3830_s25   ;;  %s3344_s24 = sphi %s3405_s24, %s3829_s24   ;;  %s3340_s23 = sphi %s3403_s23, %s3828_s23  }
  0x15   : > { %p31_p5 = scmp.ge.s32.totalorder %s30_s29, 2  ;;  %s2591_s6 = sadd.s32 4294967295, %s3364_s28  }
  0x16   : > { %p127_p6 = scmp.ne.s32.totalorder %s3344_s24, %s3340_s23  ;;  %p128_p7 = scmp.eq.s32.totalorder %s3364_s28, 0 }
  0x17   : > { %s3835_s29 = smov (%p31_p5, %s30_s29), 0  ;;  %s3837_s30 = smov (!%p31_p5, %s33_s30), %s3360_s27 }
  0x18   : > { %p35_p8 = scmp.ge.s32.totalorder %s3837_s30, 2  ;;  %p159_p9 = scmp.eq.s32.totalorder %s2591_s6, 3 }
  0x19   : > { %s116_s7 = ssub.s32 %s3356_s26, %s3835_s29  ;;  %p129_p10 = por %p128_p7, %p127_p6 }
  0x1a   : > { %s3839_s30 = smov (%p35_p8, %s3837_s30), 0  ;;  %p3451_p11 = por %p159_p9, %p127_p6 }
  0x1b   : > { %s115_s9 = ssub.s32 %s3360_s27, %s3839_s30  ;;  %s120_s11 = sadd.s32 1, %s3344_s24 }
  0x1c   : > { %s117_s10 = sor.u32 %s116_s7, %s115_s9  ;;  %p2594_p13 = scmp.ge.s32.totalorder %s3364_s28, 4 }
  0x1d   : > { %p118_p12 = scmp.eq.s32.totalorder %s117_s10, 0 }
  0x1e   : > { %200 = sbr.rel (%p2594_p13) target bundleno = 52 (0x34), region = 24 }
  0x1f   : > { %s3459_s12 = scalar_select %p118_p12, %s3344_s24, %s120_s11  }
  0x25   : > { %211 = sbr.rel (!%p129_p10) target bundleno = 52 (0x34), region = 32  ;;  %s213_s13 = sand.u32 (%p129_p10), 1, %s3344_s24  }
  0x26   : > { %s3230_s14 = smul.u32 (%p129_p10), 3, %s3356_s26 }
  0x27   : > { %s3229_s15 = smul.u32 (%p129_p10), 96, %s213_s13 }
  0x28   : > { %s3231_s16 = smul.u32 (%p129_p10), 24, %s3360_s27 }
  0x29   : > { %s215_s22 = scalar_lea.vmem (%p129_p10), [#allocation4], %s3229_s15 }
  0x2a   : > { %s219_s17 = sadd.s32 (%p129_p10), %s3231_s16, %s3230_s14 }
  0x2b   : > { %s2597_s18 = sshll.u32 (%p129_p10), %s219_s17, 3 }
  0x2c   : > { %s221_s21 = scalar_lea.vmem %s3821_s4, %s2597_s18 }
  0x2d   : > { %v271_v0 = vld [vmem:[%s221_s21] sm:$0xff]  ;;  %v273_v1 = vld [vmem:[%s221_s21 + $0x8] sm:$0xff]  ;;  %v275_v2 = vld [vmem:[%s221_s21 + $0x10] sm:$0xff] }
  0x2e   : > { %272 = vst [vmem:[%s215_s22] sm:$0xff] %v271_v0  ;;  %274 = vst [vmem:[%s215_s22 + $0x8] sm:$0xff] %v273_v1  ;;  %v277_v3 = vld [vmem:[%s221_s21 + $0x30] sm:$0xff]  ;;  %v279_v4 = vld [vmem:[%s221_s21 + $0x38] sm:$0xff] }
  0x2f   : > { %276 = vst [vmem:[%s215_s22 + $0x10] sm:$0xff] %v275_v2  ;;  %v281_v5 = vld [vmem:[%s221_s21 + $0x40] sm:$0xff]  ;;  %278 = vst [vmem:[%s215_s22 + $0x18] sm:$0xff] %v277_v3  ;;  %v285_v7 = vld [vmem:[%s221_s21 + $0x68] sm:$0xff] }
  0x30   : > { %280 = vst [vmem:[%s215_s22 + $0x20] sm:$0xff] %v279_v4  ;;  %282 = vst [vmem:[%s215_s22 + $0x28] sm:$0xff] %v281_v5  ;;  %v283_v6 = vld [vmem:[%s221_s21 + $0x60] sm:$0xff]  ;;  %v287_v8 = vld [vmem:[%s221_s21 + $0x70] sm:$0xff] }
  0x31   : > { %284 = vst [vmem:[%s215_s22 + $0x30] sm:$0xff] %v283_v6  ;;  %286 = vst [vmem:[%s215_s22 + $0x38] sm:$0xff] %v285_v7  ;;  %v289_v9 = vld [vmem:[%s221_s21 + $0x90] sm:$0xff]  ;;  %v291_v10 = vld [vmem:[%s221_s21 + $0x98] sm:$0xff] }
  0x32   : > { %288 = vst [vmem:[%s215_s22 + $0x40] sm:$0xff] %v287_v8  ;;  %v293_v11 = vld [vmem:[%s221_s21 + $0xa0] sm:$0xff]  ;;  %290 = vst [vmem:[%s215_s22 + $0x48] sm:$0xff] %v289_v9 }
  0x33   : > { %292 = vst [vmem:[%s215_s22 + $0x50] sm:$0xff] %v291_v10  ;;  %294 = vst [vmem:[%s215_s22 + $0x58] sm:$0xff] %v293_v11 }
  0x34 PF: > { %p2598_p0 = scmp.ge.s32.totalorder %s3364_s28, 1  ;;  %p299_p1 = scmp.lt.s32.totalorder %s3364_s28, 5 }
  0x36   : > { %p300_p2 = pnand %p2598_p0, %p299_p1 }
  0x37   : > { %p346_p3 = scmp.lt.s32.totalorder (!%p300_p2), %s3348_s25, 1  ;;  %s3472_s6 = sshll.u32 (!%p300_p2), %s3352_s0, 2  ;;  %v3367_v12 = vmov (!%p300_p2), 0.0|0.0   ;;  %vm3368_vm0 = vmmov (!%p300_p2), 0   ;;  %v3369_v13 = vmov (!%p300_p2), 0.0   ;;  %vm375_vm1 = vcmask (!%p300_p2), 261120  }
  0x38   : > { %303 = sbr.rel (%p300_p2) target bundleno = 604 (0x25c), region = 70  ;;  %3085 = vmatprep.subr.bf16.mxu0 (!%p300_p2), %v3367_v12  ;;  %2829 = vmatprep.mubr.msk.f32.mxu0 (!%p300_p2), %vm3368_vm0, %v3369_v13  ;;  %p352_p4 = scmp.lt.s32.totalorder (!%p300_p2), %s3472_s6, 7  ;;  %vm834_vm2 = vcmask (!%p300_p2), 64512  }
  0x39   : > { %3091 = vmatprep.subr.bf16.mxu1 (!%p300_p2), %v3367_v12  ;;  %2840 = vmatprep.mubr.msk.f32.mxu1 (!%p300_p2), %vm3368_vm0, %v3369_v13  ;;  %s3826_s1 = sld [smem:[#allocation7_spill]] (!%p300_p2)  ;;  %s3827_s2 = sld [smem:[#allocation8_spill]] (!%p300_p2) }
  0x3a   : > { %s306_s11 = sand.u32 (!%p300_p2), 1, %s3340_s23  }
  0x3f   : > { %s347_s7 = scalar_select %p346_p3, %s3348_s25, 1 }
  0x40   : > { %s353_s9 = scalar_select %p352_p4, %s3472_s6, 7 }
  0x41   : > { %s3233_s10 = smul.u32 96, %s347_s7 }
  0x42   : > { %s2700_s15 = sshll.u32 %s353_s9, 5  ;;  %s2601_s16 = sshll.u32 %s353_s9, 3 }
  0x43   : > { %s3486_s14 = scalar_lea.vmem %s3826_s1, %s3233_s10  ;;  %s3497_s19 = scalar_lea.vmem %s3820_s3, %s2700_s15 }
  0x44   : > { %v371_v14 = vld [vmem:[%s3486_s14] sm:$0xff]  ;;  %v372_v15 = vld [vmem:[%s3486_s14 + $0x8] sm:$0xff]  ;;  %v373_v16 = vld [vmem:[%s3486_s14 + $0x10] sm:$0xff]  ;;  %s3506_s22 = scalar_lea.vmem %s3827_s2, %s2601_s16  ;;  %s3685_s7 = smul.u32 36, %s3352_s0 }
  0x45   : > { %v3491_v17 = vpack.c.bf16 %v372_v15, %v371_v14  ;;  %v374_v18 = vld [vmem:[%s3486_s14 + $0x18] sm:$0xff]  ;;  %v2607_v20 = vld [vmem:[%s3486_s14 + $0x20] sm:$0xff]  ;;  %v2608_v21 = vld [vmem:[%s3486_s14 + $0x28] sm:$0xff]  ;;  %s1322_s2 = sadd.s32 1, %s3472_s6 }
  0x46   : > { %v3500_v19 = vpack.c.bf16 %v374_v18, %v373_v16  ;;  %v367_v22 = vld [vmem:[%s3497_s19] sm:$0xff]  ;;  %v368_v23 = vld [vmem:[%s3497_s19 + $0x8] sm:$0xff]  ;;  %v369_v25 = vld [vmem:[%s3497_s19 + $0x10] sm:$0xff]  ;;  %v3518_v28 = vpack.c.bf16 %v2608_v21, %v2607_v20  ;;  %s837_s9 = sadd.s32 3, %s3685_s7  ;;  %s854_s10 = sadd.s32 6, %s3685_s7 }
  0x47   : > { %3087 = vmatpush3.bf16.msra.mxu0 %v3491_v17  ;;  %v3512_v24 = vpack.c.bf16 %v368_v23, %v367_v22  ;;  %v370_v26 = vld [vmem:[%s3497_s19 + $0x18] sm:$0xff]  ;;  %v366_v27 = vld [vmem:[%s3506_s22] sm:$0xff]  ;;  %v2609_v29 = vld [vmem:[%s3486_s14 + $0x30] sm:$0xff]  ;;  %s820_s13 = sld [smem:[#allocation3 + %s3685_s7]]  ;;  %s824_s16 = sadd.s32 1, %s3685_s7 }
  0x48   : > { %3088 = vmatprep.subr.bf16.mxu0 %v3367_v12  ;;  %v2610_v30 = vld [vmem:[%s3486_s14 + $0x38] sm:$0xff]  ;;  %v3524_v31 = vpack.c.bf16 %v370_v26, %v369_v25  ;;  %v2613_v33 = vld [vmem:[%s3486_s14 + $0x40] sm:$0xff]  ;;  %v2614_v34 = vld [vmem:[%s3486_s14 + $0x48] sm:$0xff]  ;;  %s855_s15 = sld [smem:[#allocation3 + %s854_s10]]  ;;  %s842_s17 = sadd.s32 4, %s3685_s7 }
  0x49   : > { %3093 = vmatpush3.bf16.msra.mxu1 %v3512_v24  ;;  %v3529_v32 = vpack.c.bf16 %v2610_v30, %v2609_v29  ;;  %v3539_v35 = vpack.c.bf16 %v2614_v34, %v2613_v33  ;;  %v2615_v36 = vld [vmem:[%s3486_s14 + $0x50] sm:$0xff]  ;;  %v2616_v37 = vld [vmem:[%s3486_s14 + $0x58] sm:$0xff]  ;;  %v2619_v39 = vld [vmem:[%s3506_s22 + $0x8] sm:$0xff]  ;;  %s838_s14 = sld [smem:[#allocation3 + %s837_s9]]  ;;  %s859_s18 = sadd.s32 7, %s3685_s7 }
  0x4a   : > { %3094 = vmatprep.subr.bf16.mxu1 %v3367_v12  ;;  %v3113_v38 = vpack.c.bf16 %v2616_v37, %v2615_v36  ;;  %v2645_v40 = vld [vmem:[%s3506_s22 + $0x10] sm:$0xff]  ;;  %v2670_v41 = vld [vmem:[%s3506_s22 + $0x18] sm:$0xff]  ;;  %v2620_v46 = vld [vmem:[%s3497_s19 + $0x20] sm:$0xff]  ;;  %s825_s20 = sld [smem:[#allocation3 + %s824_s16]]  ;;  %s829_s23 = sadd.s32 2, %s3685_s7 }
  0x4b   : > { %3090 = vmatpush3.bf16.msra.mxu0 %v3500_v19  ;;  %v2621_v47 = vld [vmem:[%s3497_s19 + $0x28] sm:$0xff]  ;;  %v2622_v49 = vld [vmem:[%s3497_s19 + $0x30] sm:$0xff]  ;;  %v2623_v50 = vld [vmem:[%s3497_s19 + $0x38] sm:$0xff]  ;;  %s843_s21 = sld [smem:[#allocation3 + %s842_s17]]  ;;  %s847_s1 = sadd.s32 5, %s3685_s7 }
  0x4c   : > { %3097 = vmatprep.subr.bf16.mxu0 %v3367_v12  ;;  %v3128_v48 = vpack.c.bf16 %v2621_v47, %v2620_v46  ;;  %v3131_v53 = vpack.c.bf16 %v2623_v50, %v2622_v49  ;;  %v2646_v58 = vld [vmem:[%s3497_s19 + $0x40] sm:$0xff]  ;;  %v2647_v59 = vld [vmem:[%s3497_s19 + $0x48] sm:$0xff]  ;;  %v2648_v61 = vld [vmem:[%s3497_s19 + $0x50] sm:$0xff]  ;;  %s860_s22 = sld [smem:[#allocation3 + %s859_s18]]  ;;  %s864_s9 = sadd.s32 8, %s3685_s7 }
  0x4d   : > { %3096 = vmatpush3.bf16.msra.mxu1 %v3524_v31  ;;  %v3164_v60 = vpack.c.bf16 %v2647_v59, %v2646_v58  ;;  %v2649_v62 = vld [vmem:[%s3497_s19 + $0x58] sm:$0xff]  ;;  %v2671_v6 = vld [vmem:[%s3497_s19 + $0x60] sm:$0xff]  ;;  %v2672_v7 = vld [vmem:[%s3497_s19 + $0x68] sm:$0xff] }
  0x4e   : > { %2830 = vmatmul.mubr.msk.f32.vlgmr.msra.gmra.mrb[0].mxu0 %vm375_vm1, %v366_v27  ;;  %3103 = vmatprep.subr.bf16.mxu1 %v3367_v12  ;;  %v3167_v1 = vpack.c.bf16 %v2649_v62, %v2648_v61  ;;  %v3200_v8 = vpack.c.bf16 %v2672_v7, %v2671_v6  ;;  %v2673_v9 = vld [vmem:[%s3497_s19 + $0x70] sm:$0xff]  ;;  %v2674_v10 = vld [vmem:[%s3497_s19 + $0x78] sm:$0xff]  ;;  %s3694_s19 = smul.u32 96, %s306_s11  ;;  %s830_s11 = sld [smem:[#allocation3 + %s829_s23]] }
  0x4f   : > { %3099 = vmatpush3.bf16.msra.mxu0 %v3518_v28  ;;  %2851 = vmatprep.mubr.msk.f32.mxu0 %vm3368_vm0, %v3369_v13  ;;  %v3203_v15 = vpack.c.bf16 %v2674_v10, %v2673_v9  ;;  %v839_v22 = vstv %s838_s14  ;;  %s865_s14 = sld [smem:[#allocation3 + %s864_s9]] }
  0x50   : > { %3100 = vmatprep.subr.bf16.mxu0 %v3367_v12  ;;  %s3701_s10 = scalar_lea.vmem [#allocation4], %s3694_s19 }
  0x51   : > { %v853_v30 = vld [vmem:[%s3701_s10 + $0x10] sm:$0xff] }
  0x52   : > { %v861_v33 = vstv %s860_s22  ;;  %s3715_s22 = scalar_lea.vmem [#allocation5], %s3694_s19 }
  0x53   : > { %3102 = vmatpush3.bf16.msra.mxu0 %v3529_v32 }
  0x54   : > { %3109 = vmatprep.subr.bf16.mxu0 %v3367_v12 }
  0x55   : > { %v866_v47 = vstv %s865_s14 }
  0x56   : > { %2852 = vmatmul.mubr.msk.f32.vlgmr.msra.gmra.mrb[2].mxu0 %vm375_vm1, %v366_v27 }
  0x57   : > { %3111 = vmatpush3.bf16.msra.mxu0 %v3539_v35  ;;  %2873 = vmatprep.mubr.msk.f32.mxu0 %vm3368_vm0, %v3369_v13 }
  0x58   : > { %3112 = vmatprep.subr.bf16.mxu0 %v3367_v12 }
  0x5b   : > { %3114 = vmatpush3.bf16.msra.mxu0 %v3113_v38 }
  0x5c   : > { %3121 = vmatprep.subr.bf16.mxu0 %v3367_v12 }
  0x5e   : > { %2874 = vmatmul.mubr.msk.f32.vlgmr.msra.gmra.mrb[4].mxu0 %vm375_vm1, %v366_v27  ;;  %v819_v27 = vld [vmem:[%s3701_s10] sm:$0xff] }
  0x5f   : > { %3123 = vmatpush3.bf16.msra.mxu0 %v3491_v17  ;;  %2895 = vmatprep.mubr.msk.f32.mxu0 %vm3368_vm0, %v3369_v13 }
  0x60   : > { %3124 = vmatprep.subr.bf16.mxu0 %v3367_v12 }
  0x63   : > { %3126 = vmatpush3.bf16.msra.mxu0 %v3500_v19 }
  0x64   : > { %3133 = vmatprep.subr.bf16.mxu0 %v3367_v12 }
  0x66   : > { %2896 = vmatmul.mubr.msk.f32.vlgmr.msra.gmra.mrb[6].mxu0 %vm375_vm1, %v2619_v39 }
  0x67   : > { %3135 = vmatpush3.bf16.msra.mxu0 %v3518_v28  ;;  %2917 = vmatprep.mubr.msk.f32.mxu0 %vm3368_vm0, %v3369_v13 }
  0x68   : > { %3136 = vmatprep.subr.bf16.mxu0 %v3367_v12 }
  0x6b   : > { %3138 = vmatpush3.bf16.msra.mxu0 %v3529_v32 }
  0x6c   : > { %3145 = vmatprep.subr.bf16.mxu0 %v3367_v12 }
  0x6e   : > { %2918 = vmatmul.mubr.msk.f32.vlgmr.msra.gmra.mrb[8].mxu0 %vm375_vm1, %v2619_v39 }
  0x6f   : > { %3147 = vmatpush3.bf16.msra.mxu0 %v3539_v35  ;;  %2939 = vmatprep.mubr.msk.f32.mxu0 %vm3368_vm0, %v3369_v13 }
  0x70   : > { %3148 = vmatprep.subr.bf16.mxu0 %v3367_v12 }
  0x73   : > { %3150 = vmatpush3.bf16.msra.mxu0 %v3113_v38 }
  0x74   : > { %3157 = vmatprep.subr.bf16.mxu0 %v3367_v12 }
  0x76   : > { %2940 = vmatmul.mubr.msk.f32.vlgmr.msra.gmra.mrb[10].mxu0 %vm375_vm1, %v2619_v39 }
  0x77   : > { %3159 = vmatpush3.bf16.msra.mxu0 %v3491_v17  ;;  %2961 = vmatprep.mubr.msk.f32.mxu0 %vm3368_vm0, %v3369_v13 }
  0x78   : > { %3160 = vmatprep.subr.bf16.mxu0 %v3367_v12 }
  0x7b   : > { %3162 = vmatpush3.bf16.msra.mxu0 %v3500_v19 }
  0x7c   : > { %3169 = vmatprep.subr.bf16.mxu0 %v3367_v12 }
  0x7e   : > { %2962 = vmatmul.mubr.msk.f32.vlgmr.msra.gmra.mrb[12].mxu0 %vm375_vm1, %v2645_v40 }
  0x7f   : > { %3171 = vmatpush3.bf16.msra.mxu0 %v3518_v28  ;;  %2983 = vmatprep.mubr.msk.f32.mxu0 %vm3368_vm0, %v3369_v13 }
  0x80   : > { %3172 = vmatprep.subr.bf16.mxu0 %v3367_v12 }
  0x83   : > { %3174 = vmatpush3.bf16.msra.mxu0 %v3529_v32 }
  0x84   : > { %3181 = vmatprep.subr.bf16.mxu0 %v3367_v12 }
  0x86   : > { %2984 = vmatmul.mubr.msk.f32.vlgmr.msra.gmra.mrb[14].mxu0 %vm375_vm1, %v2645_v40 }
  0x87   : > { %3183 = vmatpush3.bf16.msra.mxu0 %v3539_v35  ;;  %3005 = vmatprep.mubr.msk.f32.mxu0 %vm3368_vm0, %v3369_v13 }
  0x88   : > { %3184 = vmatprep.subr.bf16.mxu0 %v3367_v12 }
  0x8b   : > { %3186 = vmatpush3.bf16.msra.mxu0 %v3113_v38 }
  0x8c   : > { %3193 = vmatprep.subr.bf16.mxu0 %v3367_v12 }
  0x8e   : > { %3006 = vmatmul.mubr.msk.f32.vlgmr.msra.gmra.mrb[16].mxu0 %vm375_vm1, %v2645_v40 }
  0x8f   : > { %3195 = vmatpush3.bf16.msra.mxu0 %v3491_v17  ;;  %3027 = vmatprep.mubr.msk.f32.mxu0 %vm3368_vm0, %v3369_v13 }
  0x90   : > { %3196 = vmatprep.subr.bf16.mxu0 %v3367_v12 }
  0x93   : > { %3198 = vmatpush3.bf16.msra.mxu0 %v3500_v19 }
  0x94   : > { %3205 = vmatprep.subr.bf16.mxu0 %v3367_v12 }
  0x96   : > { %3028 = vmatmul.mubr.msk.f32.vlgmr.msra.gmra.mrb[18].mxu0 %vm375_vm1, %v2670_v41 }
  0x97   : > { %3207 = vmatpush3.bf16.msra.mxu0 %v3518_v28  ;;  %3049 = vmatprep.mubr.msk.f32.mxu0 %vm3368_vm0, %v3369_v13  ;;  %v836_v28 = vld [vmem:[%s3701_s10 + $0x8] sm:$0xff] }
  0x98   : > { %3208 = vmatprep.subr.bf16.mxu0 %v3367_v12 }
  0x9b   : > { %3210 = vmatpush3.bf16.msra.mxu0 %v3529_v32  ;;  %v844_v32 = vstv %s843_s21 }
  0x9c   : > { %3217 = vmatprep.subr.bf16.mxu0 %v3367_v12 }
  0x9e   : > { %3050 = vmatmul.mubr.msk.f32.vlgmr.msra.gmra.mrb[20].mxu0 %vm375_vm1, %v2670_v41 }
  0x9f   : > { %3219 = vmatpush3.bf16.msra.mxu0 %v3539_v35  ;;  %3071 = vmatprep.mubr.msk.f32.mxu0 %vm3368_vm0, %v3369_v13 }
  0xa0   : > { %3220 = vmatprep.subr.bf16.mxu0 %v3367_v12 }
  0xa3   : > { %3222 = vmatpush3.bf16.msra.mxu0 %v3113_v38 }
  0xa6   : > { %3072 = vmatmul.mubr.msk.f32.vlgmr.msra.gmra.mrb[22].mxu0 %vm375_vm1, %v2670_v41 }
 0x121   : > { %v445_v42 = vpop.f32.mrb[0].mxu0 }
 0x122   : > { %v2831_v43 = vpop.f32.mrb[1].mxu0  ;;  %2841 = vmatmul.mubr.msk.f32.vlgmr.msra.gmra.mrb[0].mxu1 %vm375_vm1, %v445_v42 }
 0x123   : > { %3105 = vmatpush3.bf16.msra.mxu1 %v3512_v24  ;;  %2862 = vmatprep.mubr.msk.f32.mxu1 %vm3368_vm0, %v3369_v13 }
 0x124   : > { %3106 = vmatprep.subr.bf16.mxu1 %v3367_v12 }
 0x127   : > { %3108 = vmatpush3.bf16.msra.mxu1 %v3524_v31 }
 0x128   : > { %3115 = vmatprep.subr.bf16.mxu1 %v3367_v12 }
 0x129   : > { %v593_v44 = vpop.f32.mrb[2].mxu0 }
 0x12a   : > { %v2853_v45 = vpop.f32.mrb[3].mxu0  ;;  %2863 = vmatmul.mubr.msk.f32.vlgmr.msra.gmra.mrb[2].mxu1 %vm375_vm1, %v593_v44 }
 0x12b   : > { %3117 = vmatpush3.bf16.msra.mxu1 %v3512_v24  ;;  %2884 = vmatprep.mubr.msk.f32.mxu1 %vm3368_vm0, %v3369_v13  ;;  %v856_v24 = vstv %s855_s15  ;;  %s3706_s15 = smul.u32 9, %s1322_s2  ;;  %v831_v45 = vstv %s830_s11 }
 0x12c   : > { %3118 = vmatprep.subr.bf16.mxu1 %v3367_v12 }
 0x12d   : > { %s1343_s7 = sadd.s32 3, %s3706_s15  ;;  %s1326_s16 = sld [smem:[#allocation3 + %s3706_s15]] }
 0x12e   : > { %s1344_s2 = sld [smem:[#allocation3 + %s1343_s7]]  ;;  %s1330_s18 = sadd.s32 1, %s3706_s15 }
 0x12f   : > { %3120 = vmatpush3.bf16.msra.mxu1 %v3524_v31  ;;  %v826_v31 = vstv %s825_s20  ;;  %s1348_s20 = sadd.s32 4, %s3706_s15  ;;  %s1365_s21 = sadd.s32 7, %s3706_s15 }
 0x130   : > { %3127 = vmatprep.subr.bf16.mxu1 %v3367_v12  ;;  %s1331_s23 = sld [smem:[#allocation3 + %s1330_s18]]  ;;  %s1335_s11 = sadd.s32 2, %s3706_s15 }
 0x131   : > { %v741_v51 = vpop.f32.mrb[4].mxu0  ;;  %s1349_s19 = sld [smem:[#allocation3 + %s1348_s20]]  ;;  %s1370_s14 = sadd.s32 8, %s3706_s15 }
 0x132   : > { %v2875_v52 = vpop.f32.mrb[5].mxu0  ;;  %2885 = vmatmul.mubr.msk.f32.vlgmr.msra.gmra.mrb[4].mxu1 %vm375_vm1, %v741_v51  ;;  %s1366_s9 = sld [smem:[#allocation3 + %s1365_s21]]  ;;  %s1827_s7 = sadd.s32 2, %s3472_s6 }
 0x133   : > { %3129 = vmatpush3.bf16.msra.mxu1 %v3128_v48  ;;  %2906 = vmatprep.mubr.msk.f32.mxu1 %vm3368_vm0, %v3369_v13 }
 0x134   : > { %3130 = vmatprep.subr.bf16.mxu1 %v3367_v12 }
 0x137   : > { %3132 = vmatpush3.bf16.msra.mxu1 %v3131_v53 }
 0x138   : > { %3139 = vmatprep.subr.bf16.mxu1 %v3367_v12 }
 0x139   : > { %v950_v54 = vpop.f32.mrb[6].mxu0 }
 0x13a   : > { %v2897_v55 = vpop.f32.mrb[7].mxu0  ;;  %2907 = vmatmul.mubr.msk.f32.vlgmr.msra.gmra.mrb[6].mxu1 %vm375_vm1, %v950_v54 }
 0x13b   : > { %3141 = vmatpush3.bf16.msra.mxu1 %v3128_v48  ;;  %2928 = vmatprep.mubr.msk.f32.mxu1 %vm3368_vm0, %v3369_v13 }
 0x13c   : > { %3142 = vmatprep.subr.bf16.mxu1 %v3367_v12 }
 0x13f   : > { %3144 = vmatpush3.bf16.msra.mxu1 %v3131_v53 }
 0x140   : > { %3151 = vmatprep.subr.bf16.mxu1 %v3367_v12 }
 0x141   : > { %v1097_v56 = vpop.f32.mrb[8].mxu0 }
 0x142   : > { %v2919_v57 = vpop.f32.mrb[9].mxu0  ;;  %2929 = vmatmul.mubr.msk.f32.vlgmr.msra.gmra.mrb[8].mxu1 %vm375_vm1, %v1097_v56  ;;  %v1327_v56 = vstv %s1326_s16 }
 0x143   : > { %3153 = vmatpush3.bf16.msra.mxu1 %v3128_v48  ;;  %2950 = vmatprep.mubr.msk.f32.mxu1 %vm3368_vm0, %v3369_v13  ;;  %v1345_v57 = vstv %s1344_s2  ;;  %s1371_s2 = sld [smem:[#allocation3 + %s1370_s14]] }
 0x144   : > { %3154 = vmatprep.subr.bf16.mxu1 %v3367_v12 }
 0x147   : > { %3156 = vmatpush3.bf16.msra.mxu1 %v3131_v53 }
 0x148   : > { %3163 = vmatprep.subr.bf16.mxu1 %v3367_v12 }
 0x149   : > { %v1244_v63 = vpop.f32.mrb[10].mxu0 }
 0x14a   : > { %v2941_v0 = vpop.f32.mrb[11].mxu0  ;;  %2951 = vmatmul.mubr.msk.f32.vlgmr.msra.gmra.mrb[10].mxu1 %vm375_vm1, %v1244_v63 }
 0x14b   : > { %3165 = vmatpush3.bf16.msra.mxu1 %v3164_v60  ;;  %2972 = vmatprep.mubr.msk.f32.mxu1 %vm3368_vm0, %v3369_v13  ;;  %v2639_v0 = vld [vmem:[%s3701_s10 + $0x18] sm:$0xff] }
 0x14c   : > { %3166 = vmatprep.subr.bf16.mxu1 %v3367_v12 }
 0x14f   : > { %3168 = vmatpush3.bf16.msra.mxu1 %v3167_v1 }
 0x150   : > { %3175 = vmatprep.subr.bf16.mxu1 %v3367_v12 }
 0x151   : > { %v1456_v2 = vpop.f32.mrb[12].mxu0 }
 0x152   : > { %v2963_v3 = vpop.f32.mrb[13].mxu0  ;;  %2973 = vmatmul.mubr.msk.f32.vlgmr.msra.gmra.mrb[12].mxu1 %vm375_vm1, %v1456_v2  ;;  %v2643_v2 = vld [vmem:[%s3701_s10 + $0x28] sm:$0xff] }
 0x153   : > { %3177 = vmatpush3.bf16.msra.mxu1 %v3164_v60  ;;  %2994 = vmatprep.mubr.msk.f32.mxu1 %vm3368_vm0, %v3369_v13  ;;  %v1332_v3 = vstv %s1331_s23 }
 0x154   : > { %3178 = vmatprep.subr.bf16.mxu1 %v3367_v12 }
 0x157   : > { %3180 = vmatpush3.bf16.msra.mxu1 %v3167_v1 }
 0x158   : > { %3187 = vmatprep.subr.bf16.mxu1 %v3367_v12 }
 0x159   : > { %v1603_v4 = vpop.f32.mrb[14].mxu0 }
 0x15a   : > { %v2985_v5 = vpop.f32.mrb[15].mxu0  ;;  %2995 = vmatmul.mubr.msk.f32.vlgmr.msra.gmra.mrb[14].mxu1 %vm375_vm1, %v1603_v4  ;;  %v1350_v4 = vstv %s1349_s19 }
 0x15b   : > { %3189 = vmatpush3.bf16.msra.mxu1 %v3164_v60  ;;  %3016 = vmatprep.mubr.msk.f32.mxu1 %vm3368_vm0, %v3369_v13  ;;  %v1367_v5 = vstv %s1366_s9 }
 0x15c   : > { %3190 = vmatprep.subr.bf16.mxu1 %v3367_v12 }
 0x15f   : > { %3192 = vmatpush3.bf16.msra.mxu1 %v3167_v1  ;;  %v2641_v1 = vld [vmem:[%s3701_s10 + $0x20] sm:$0xff] }
 0x160   : > { %3199 = vmatprep.subr.bf16.mxu1 %v3367_v12 }
 0x161   : > { %v1750_v11 = vpop.f32.mrb[16].mxu0 }
 0x162   : > { %v3007_v14 = vpop.f32.mrb[17].mxu0  ;;  %3017 = vmatmul.mubr.msk.f32.vlgmr.msra.gmra.mrb[16].mxu1 %vm375_vm1, %v1750_v11 }
 0x163   : > { %3201 = vmatpush3.bf16.msra.mxu1 %v3200_v8  ;;  %3038 = vmatprep.mubr.msk.f32.mxu1 %vm3368_vm0, %v3369_v13 }
 0x164   : > { %3202 = vmatprep.subr.bf16.mxu1 %v3367_v12 }
 0x167   : > { %3204 = vmatpush3.bf16.msra.mxu1 %v3203_v15 }
 0x168   : > { %3211 = vmatprep.subr.bf16.mxu1 %v3367_v12 }
 0x169   : > { %v1961_v16 = vpop.f32.mrb[18].mxu0 }
 0x16a   : > { %v3029_v17 = vpop.f32.mrb[19].mxu0  ;;  %3039 = vmatmul.mubr.msk.f32.vlgmr.msra.gmra.mrb[18].mxu1 %vm375_vm1, %v1961_v16 }
 0x16b   : > { %3213 = vmatpush3.bf16.msra.mxu1 %v3200_v8  ;;  %3060 = vmatprep.mubr.msk.f32.mxu1 %vm3368_vm0, %v3369_v13 }
 0x16c   : > { %3214 = vmatprep.subr.bf16.mxu1 %v3367_v12 }
 0x16f   : > { %3216 = vmatpush3.bf16.msra.mxu1 %v3203_v15 }
 0x170   : > { %3223 = vmatprep.subr.bf16.mxu1 %v3367_v12 }
 0x171   : > { %v2108_v18 = vpop.f32.mrb[20].mxu0 }
 0x172   : > { %v3051_v19 = vpop.f32.mrb[21].mxu0  ;;  %3061 = vmatmul.mubr.msk.f32.vlgmr.msra.gmra.mrb[20].mxu1 %vm375_vm1, %v2108_v18 }
 0x173   : > { %3225 = vmatpush3.bf16.msra.mxu1 %v3200_v8  ;;  %3082 = vmatprep.mubr.msk.f32.mxu1 %vm3368_vm0, %v3369_v13  ;;  %v821_v13 = vstv %s820_s13  ;;  %s848_s13 = sld [smem:[#allocation3 + %s847_s1]]  ;;  %s1360_s1 = sadd.s32 6, %s3706_s15 }
 0x174   : > { %3226 = vmatprep.subr.bf16.mxu1 %v3367_v12  ;;  %s1361_s17 = sld [smem:[#allocation3 + %s1360_s1]] }
 0x175   : > { %s1336_s1 = sld [smem:[#allocation3 + %s1335_s11]] }
 0x177   : > { %3228 = vmatpush3.bf16.msra.mxu1 %v3203_v15 }
 0x179   : > { %v2255_v20 = vpop.f32.mrb[22].mxu0  ;;  %v849_v46 = vstv %s848_s13  ;;  %s1353_s13 = sadd.s32 5, %s3706_s15 }
 0x17a   : > { %v3073_v21 = vpop.f32.mrb[23].mxu0  ;;  %3083 = vmatmul.mubr.msk.f32.vlgmr.msra.gmra.mrb[22].mxu1 %vm375_vm1, %v2255_v20  ;;  %v1362_v58 = vstv %s1361_s17  ;;  %s1354_s16 = sld [smem:[#allocation3 + %s1353_s13]]  ;;  %s3730_s17 = smul.u32 9, %s1827_s7 }
 0x17b   : > { %v1337_v19 = vstv %s1336_s1  ;;  %v1372_v21 = vstv %s1371_s2 }
 0x17c   : > { %s1848_s15 = sadd.s32 3, %s3730_s17  ;;  %s1865_s18 = sadd.s32 6, %s3730_s17 }
 0x17d   : > { %s1831_s20 = sld [smem:[#allocation3 + %s3730_s17]]  ;;  %s1835_s19 = sadd.s32 1, %s3730_s17 }
 0x17e   : > { %s1849_s21 = sld [smem:[#allocation3 + %s1848_s15]]  ;;  %s1853_s9 = sadd.s32 4, %s3730_s17 }
 0x17f   : > { %s1866_s23 = sld [smem:[#allocation3 + %s1865_s18]]  ;;  %s1870_s11 = sadd.s32 7, %s3730_s17 }
 0x180   : > { %v1355_v20 = vstv %s1354_s16  ;;  %s1836_s13 = sld [smem:[#allocation3 + %s1835_s19]]  ;;  %s1840_s1 = sadd.s32 2, %s3730_s17 }
 0x181   : > { %s1854_s14 = sld [smem:[#allocation3 + %s1853_s9]]  ;;  %s1858_s16 = sadd.s32 5, %s3730_s17 }
 0x182   : > { %s1871_s7 = sld [smem:[#allocation3 + %s1870_s11]]  ;;  %s1875_s2 = sadd.s32 8, %s3730_s17 }
 0x183   : > { %s2332_s15 = sadd.s32 3, %s3472_s6  ;;  %s1841_s18 = sld [smem:[#allocation3 + %s1840_s1]] }
 0x1f5   : > { %v518_v12 = vpop.f32.mrb[0].mxu1 }
 0x1f6   : > { %v2842_v23 = vpop.f32.mrb[1].mxu1  ;;  %v822_v25 = vmul.f32 %v821_v13, %v518_v12  ;;  %v840_v26 = vmul.f32 %v839_v22, %v518_v12  ;;  %v857_v29 = vmul.f32 %v856_v24, %v518_v12 }
 0x1f8   : > { %v823_v34 = vadd.f32 %v822_v25, %v819_v27  ;;  %v841_v35 = vadd.f32 %v840_v26, %v836_v28  ;;  %v858_v37 = vadd.f32 %v857_v29, %v853_v30  ;;  %v1832_v28 = vstv %s1831_s20  ;;  %s1859_s20 = sld [smem:[#allocation3 + %s1858_s16]] }
 0x1f9   : > { %v1850_v29 = vstv %s1849_s21  ;;  %v1867_v30 = vstv %s1866_s23  ;;  %s1876_s21 = sld [smem:[#allocation3 + %s1875_s2]]  ;;  %s3751_s23 = smul.u32 9, %s2332_s15 }
 0x1fb   : > { %s2353_s6 = sadd.s32 3, %s3751_s23  ;;  %s2370_s17 = sadd.s32 6, %s3751_s23 }
 0x1fc   : > { %s2336_s19 = sld [smem:[#allocation3 + %s3751_s23]]  ;;  %s2345_s15 = sadd.s32 2, %s3751_s23 }
 0x1fd   : > { %v666_v36 = vpop.f32.mrb[2].mxu1  ;;  %s2354_s9 = sld [smem:[#allocation3 + %s2353_s6]] }
 0x1fe   : > { %v827_v38 = vmul.f32 %v826_v31, %v666_v36  ;;  %v845_v39 = vmul.f32 %v844_v32, %v666_v36  ;;  %v862_v40 = vmul.f32 %v861_v33, %v666_v36  ;;  %v2864_v41 = vpop.f32.mrb[3].mxu1  ;;  %v2664_v36 = vld [vmem:[%s3701_s10 + $0x30] sm:$0xff]  ;;  %s2371_s11 = sld [smem:[#allocation3 + %s2370_s17]] }
 0x1ff   : > { %v1872_v41 = vstv %s1871_s7  ;;  %s2375_s7 = sadd.s32 7, %s3751_s23 }
 0x200   : > { %v828_v42 = vadd.f32 %v827_v38, %v823_v34  ;;  %v846_v43 = vadd.f32 %v845_v39, %v841_v35  ;;  %v863_v44 = vadd.f32 %v862_v40, %v858_v37  ;;  %v2666_v37 = vld [vmem:[%s3701_s10 + $0x38] sm:$0xff]  ;;  %v2668_v38 = vld [vmem:[%s3701_s10 + $0x40] sm:$0xff]  ;;  %v1837_v39 = vstv %s1836_s13  ;;  %s2340_s13 = sadd.s32 1, %s3751_s23  ;;  %s2376_s2 = sld [smem:[#allocation3 + %s2375_s7]] }
 0x201   : > { %v1855_v40 = vstv %s1854_s14  ;;  %s2358_s14 = sadd.s32 4, %s3751_s23  ;;  %s2341_s1 = sld [smem:[#allocation3 + %s2340_s13]] }
 0x202   : > { %s2359_s16 = sld [smem:[#allocation3 + %s2358_s14]] }
 0x205   : > { %v814_v48 = vpop.f32.mrb[4].mxu1 }
 0x206   : > { %v832_v49 = vmul.f32 %v831_v45, %v814_v48  ;;  %v850_v50 = vmul.f32 %v849_v46, %v814_v48  ;;  %v867_v51 = vmul.f32 %v866_v47, %v814_v48  ;;  %v2886_v52 = vpop.f32.mrb[5].mxu1 }
 0x208   : > { %v833_v53 = vadd.f32 %v832_v49, %v828_v42  ;;  %v851_v54 = vadd.f32 %v850_v50, %v846_v43  ;;  %v868_v55 = vadd.f32 %v867_v51, %v863_v44 }
 0x20a   : > { %835 = vst.msk [vmem:[%s3715_s22] sm:$0xff] %vm834_vm2, %v833_v53  ;;  %852 = vst.msk [vmem:[%s3715_s22 + $0x8] sm:$0xff] %vm834_vm2, %v851_v54  ;;  %v1842_v53 = vstv %s1841_s18  ;;  %v1860_v54 = vstv %s1859_s20  ;;  %s2363_s18 = sadd.s32 5, %s3751_s23  ;;  %s2380_s20 = sadd.s32 8, %s3751_s23 }
 0x20b   : > { %869 = vst.msk [vmem:[%s3715_s22 + $0x10] sm:$0xff] %vm834_vm2, %v868_v55  ;;  %v1877_v55 = vstv %s1876_s21  ;;  %s2346_s21 = sld [smem:[#allocation3 + %s2345_s15]]  ;;  %s3235_s23 = smul.u32 (%p3451_p11), 24, %s3352_s0 }
 0x20c   : > { %s2364_s6 = sld [smem:[#allocation3 + %s2363_s18]] }
 0x20d   : > { %v1023_v59 = vpop.f32.mrb[6].mxu1  ;;  %s2381_s17 = sld [smem:[#allocation3 + %s2380_s20]] }
 0x20e   : > { %v1328_v60 = vmul.f32 %v1327_v56, %v1023_v59  ;;  %v1346_v61 = vmul.f32 %v1345_v57, %v1023_v59  ;;  %v1363_v62 = vmul.f32 %v1362_v58, %v1023_v59  ;;  %v2908_v63 = vpop.f32.mrb[7].mxu1 }
 0x210   : > { %v1329_v6 = vadd.f32 %v2639_v0, %v1328_v60  ;;  %v1347_v7 = vadd.f32 %v2641_v1, %v1346_v61  ;;  %v1364_v9 = vadd.f32 %v2643_v2, %v1363_v62  ;;  %v2337_v0 = vstv %s2336_s19 }
 0x211   : > { %v2355_v1 = vstv %s2354_s9  ;;  %v2372_v2 = vstv %s2371_s11 }
 0x215   : > { %v1170_v8 = vpop.f32.mrb[8].mxu1 }
 0x216   : > { %v1333_v10 = vmul.f32 %v1332_v3, %v1170_v8  ;;  %v1351_v11 = vmul.f32 %v1350_v4, %v1170_v8  ;;  %v1368_v14 = vmul.f32 %v1367_v5, %v1170_v8  ;;  %v2930_v15 = vpop.f32.mrb[9].mxu1  ;;  %v2689_v8 = vld [vmem:[%s3701_s10 + $0x48] sm:$0xff] }
 0x217   : > { %v2377_v15 = vstv %s2376_s2 }
 0x218   : > { %v1334_v16 = vadd.f32 %v1333_v10, %v1329_v6  ;;  %v1352_v17 = vadd.f32 %v1351_v11, %v1347_v7  ;;  %v1369_v18 = vadd.f32 %v1368_v14, %v1364_v9  ;;  %v2691_v9 = vld [vmem:[%s3701_s10 + $0x50] sm:$0xff]  ;;  %v2693_v10 = vld [vmem:[%s3701_s10 + $0x58] sm:$0xff]  ;;  %v2342_v11 = vstv %s2341_s1  ;;  %s3234_s10 = smul.u32 (%p3451_p11), 3, %s3348_s25 }
 0x219   : > { %v2360_v14 = vstv %s2359_s16 }
 0x21a   : > { %s2396_s8 = sadd.s32 (%p3451_p11), %s3235_s23, %s3234_s10 }
 0x21b   : > { %s2697_s19 = sshll.u32 (%p3451_p11), %s2396_s8, 3 }
 0x21c   : > { %s2398_s13 = scalar_lea.vmem (%p3451_p11), %s3822_s5, %s2697_s19 }
 0x21d   : > { %v1317_v12 = vpop.f32.mrb[10].mxu1 }
 0x21e   : > { %v1338_v13 = vmul.f32 %v1337_v19, %v1317_v12  ;;  %v1356_v22 = vmul.f32 %v1355_v20, %v1317_v12  ;;  %v1373_v23 = vmul.f32 %v1372_v21, %v1317_v12  ;;  %v2952_v24 = vpop.f32.mrb[11].mxu1 }
 0x220   : > { %v1339_v25 = vadd.f32 %v1338_v13, %v1334_v16  ;;  %v1357_v26 = vadd.f32 %v1356_v22, %v1352_v17  ;;  %v1374_v27 = vadd.f32 %v1373_v23, %v1369_v18 }
 0x222   : > { %2640 = vst.msk [vmem:[%s3715_s22 + $0x18] sm:$0xff] %vm834_vm2, %v1339_v25  ;;  %2642 = vst.msk [vmem:[%s3715_s22 + $0x20] sm:$0xff] %vm834_vm2, %v1357_v26  ;;  %v2347_v25 = vstv %s2346_s21  ;;  %v2365_v26 = vstv %s2364_s6 }
 0x223   : > { %2644 = vst.msk [vmem:[%s3715_s22 + $0x28] sm:$0xff] %vm834_vm2, %v1374_v27  ;;  %v2382_v27 = vstv %s2381_s17 }
 0x225   : > { %v1529_v31 = vpop.f32.mrb[12].mxu1 }
 0x226   : > { %v1833_v32 = vmul.f32 %v1832_v28, %v1529_v31  ;;  %v1851_v33 = vmul.f32 %v1850_v29, %v1529_v31  ;;  %v1868_v34 = vmul.f32 %v1867_v30, %v1529_v31  ;;  %v2974_v35 = vpop.f32.mrb[13].mxu1 }
 0x228   : > { %v1834_v42 = vadd.f32 %v2664_v36, %v1833_v32  ;;  %v1852_v43 = vadd.f32 %v2666_v37, %v1851_v33  ;;  %v1869_v45 = vadd.f32 %v2668_v38, %v1868_v34  ;;  %v2448_v36 = vld [vmem:[%s3715_s22] sm:$0xff] (%p3451_p11)  ;;  %v2450_v37 = vld [vmem:[%s3715_s22 + $0x8] sm:$0xff] (%p3451_p11)  ;;  %v2452_v38 = vld [vmem:[%s3715_s22 + $0x10] sm:$0xff] (%p3451_p11) }
 0x229   : > { %2449 = vst [vmem:[%s2398_s13] sm:$0xff] (%p3451_p11), %v2448_v36  ;;  %2451 = vst [vmem:[%s2398_s13 + $0x8] sm:$0xff] (%p3451_p11), %v2450_v37 }
 0x22a   : > { %2453 = vst [vmem:[%s2398_s13 + $0x10] sm:$0xff] (%p3451_p11), %v2452_v38 }
 0x22d   : > { %v1676_v44 = vpop.f32.mrb[14].mxu1 }
 0x22e   : > { %v1838_v46 = vmul.f32 %v1837_v39, %v1676_v44  ;;  %v1856_v47 = vmul.f32 %v1855_v40, %v1676_v44  ;;  %v1873_v48 = vmul.f32 %v1872_v41, %v1676_v44  ;;  %v2996_v49 = vpop.f32.mrb[15].mxu1  ;;  %v2454_v39 = vld [vmem:[%s3715_s22 + $0x18] sm:$0xff] (%p3451_p11)  ;;  %v2456_v40 = vld [vmem:[%s3715_s22 + $0x20] sm:$0xff] (%p3451_p11)  ;;  %v2458_v41 = vld [vmem:[%s3715_s22 + $0x28] sm:$0xff] (%p3451_p11) }
 0x22f   : > { %2455 = vst [vmem:[%s2398_s13 + $0x30] sm:$0xff] (%p3451_p11), %v2454_v39  ;;  %2457 = vst [vmem:[%s2398_s13 + $0x38] sm:$0xff] (%p3451_p11), %v2456_v40 }
 0x230   : > { %v1839_v50 = vadd.f32 %v1838_v46, %v1834_v42  ;;  %v1857_v51 = vadd.f32 %v1856_v47, %v1852_v43  ;;  %v1874_v52 = vadd.f32 %v1873_v48, %v1869_v45  ;;  %2459 = vst [vmem:[%s2398_s13 + $0x40] sm:$0xff] (%p3451_p11), %v2458_v41 }
 0x235   : > { %v1823_v56 = vpop.f32.mrb[16].mxu1 }
 0x236   : > { %v1843_v57 = vmul.f32 %v1842_v53, %v1823_v56  ;;  %v1861_v58 = vmul.f32 %v1860_v54, %v1823_v56  ;;  %v1878_v59 = vmul.f32 %v1877_v55, %v1823_v56  ;;  %v3018_v60 = vpop.f32.mrb[17].mxu1 }
 0x238   : > { %v1844_v61 = vadd.f32 %v1843_v57, %v1839_v50  ;;  %v1862_v62 = vadd.f32 %v1861_v58, %v1857_v51  ;;  %v1879_v63 = vadd.f32 %v1878_v59, %v1874_v52 }
 0x23a   : > { %2665 = vst.msk [vmem:[%s3715_s22 + $0x30] sm:$0xff] %vm834_vm2, %v1844_v61  ;;  %2667 = vst.msk [vmem:[%s3715_s22 + $0x38] sm:$0xff] %vm834_vm2, %v1862_v62 }
 0x23b   : > { %2669 = vst.msk [vmem:[%s3715_s22 + $0x40] sm:$0xff] %vm834_vm2, %v1879_v63 }
 0x23d   : > { %v2034_v3 = vpop.f32.mrb[18].mxu1 }
 0x23e   : > { %v2338_v4 = vmul.f32 %v2337_v0, %v2034_v3  ;;  %v2356_v5 = vmul.f32 %v2355_v1, %v2034_v3  ;;  %v2373_v6 = vmul.f32 %v2372_v2, %v2034_v3  ;;  %v3040_v7 = vpop.f32.mrb[19].mxu1 }
 0x240   : > { %v2339_v16 = vadd.f32 %v2689_v8, %v2338_v4  ;;  %v2357_v17 = vadd.f32 %v2691_v9, %v2356_v5  ;;  %v2374_v19 = vadd.f32 %v2693_v10, %v2373_v6 }
 0x241   : > { %v2460_v42 = vld [vmem:[%s3715_s22 + $0x30] sm:$0xff] (%p3451_p11)  ;;  %v2462_v43 = vld [vmem:[%s3715_s22 + $0x38] sm:$0xff] (%p3451_p11) }
 0x242   : > { %v2464_v44 = vld [vmem:[%s3715_s22 + $0x40] sm:$0xff] (%p3451_p11)  ;;  %2461 = vst [vmem:[%s2398_s13 + $0x60] sm:$0xff] (%p3451_p11), %v2460_v42  ;;  %2463 = vst [vmem:[%s2398_s13 + $0x68] sm:$0xff] (%p3451_p11), %v2462_v43 }
 0x243   : > { %2465 = vst [vmem:[%s2398_s13 + $0x70] sm:$0xff] (%p3451_p11), %v2464_v44 }
 0x245   : > { %v2181_v18 = vpop.f32.mrb[20].mxu1 }
 0x246   : > { %v2343_v20 = vmul.f32 %v2342_v11, %v2181_v18  ;;  %v2361_v21 = vmul.f32 %v2360_v14, %v2181_v18  ;;  %v2378_v12 = vmul.f32 %v2377_v15, %v2181_v18  ;;  %v3062_v13 = vpop.f32.mrb[21].mxu1 }
 0x248   : > { %v2344_v22 = vadd.f32 %v2343_v20, %v2339_v16  ;;  %v2362_v23 = vadd.f32 %v2361_v21, %v2357_v17  ;;  %v2379_v24 = vadd.f32 %v2378_v12, %v2374_v19 }
 0x24d   : > { %v2328_v28 = vpop.f32.mrb[22].mxu1  ;;  %2392 = sbr.rel (!%p3451_p11) target bundleno = 604 (0x25c), region = 78 }
 0x24e   : > { %v2348_v29 = vmul.f32 %v2347_v25, %v2328_v28  ;;  %v2366_v30 = vmul.f32 %v2365_v26, %v2328_v28  ;;  %v2383_v31 = vmul.f32 %v2382_v27, %v2328_v28  ;;  %v3084_v32 = vpop.f32.mrb[23].mxu1 }
 0x250   : > { %v2349_v33 = vadd.f32 %v2348_v29, %v2344_v22  ;;  %v2367_v34 = vadd.f32 %v2366_v30, %v2362_v23  ;;  %v2384_v35 = vadd.f32 %v2383_v31, %v2379_v24 }
 0x252   : > { %2690 = vst.msk [vmem:[%s3715_s22 + $0x48] sm:$0xff] %vm834_vm2, %v2349_v33  ;;  %2692 = vst.msk [vmem:[%s3715_s22 + $0x50] sm:$0xff] %vm834_vm2, %v2367_v34 }
 0x253   : > { %2694 = vst.msk [vmem:[%s3715_s22 + $0x58] sm:$0xff] %vm834_vm2, %v2384_v35 }
 0x259   : > { %v2466_v45 = vld [vmem:[%s3715_s22 + $0x48] sm:$0xff]  ;;  %v2468_v46 = vld [vmem:[%s3715_s22 + $0x50] sm:$0xff] }
 0x25a   : > { %v2470_v47 = vld [vmem:[%s3715_s22 + $0x58] sm:$0xff]  ;;  %2467 = vst [vmem:[%s2398_s13 + $0x90] sm:$0xff] %v2466_v45  ;;  %2469 = vst [vmem:[%s2398_s13 + $0x98] sm:$0xff] %v2468_v46 }
 0x25b   : > { %2471 = vst [vmem:[%s2398_s13 + $0xa0] sm:$0xff] %v2470_v47 }
 0x25c PF: > { %s21_s28 = sadd.s32 1, %s3364_s28   ;;  %s3828_s23 = smov %s3344_s24 }
 0x25d   : > { %p18_p5 = scmp.ge.s32.totalorder %s21_s28, 6   ;;  %s3829_s24 = smov %s3459_s12 }
 0x25e   : > { %s3830_s25 = smov %s3356_s26  ;;  %s3831_s0 = smov %s3360_s27 }
 0x25f   : > { %s3832_s26 = smov %s3835_s29  ;;  %s3833_s27 = smov %s3839_s30 }
 0x260   :  { %20 = sbr.rel (!%p18_p5) target bundleno = 20 (0x14), region = 170 }

</bundles_post_ra>
